<compile_context>
chip_gen: v7x
topology: tpu7x:2x2x1
jax: 0.10.0
libtpu: 0.0.40
codegen_flags: <defaults>
</compile_context>

<pallas_src>
import math

import jax
import jax.numpy as jnp
from jax.experimental import pallas as pl
from jax.experimental.pallas import tpu as pltpu

PAD = 0              # Constants.PAD
LN_EPS = 1e-3        # TODO(synk): matches the repo's custom LayerNormalization
                     # (eps=1e-3, unbiased std); switch to rsqrt(var+1e-6) if the
                     # reference actually uses nn.LayerNorm.
NEG_INF = -1e30
LANE = 128
SUBLANE_BF16 = 16    # bf16 packs 16 rows per sublane tile
MM_DTYPE = jnp.bfloat16   # MXU operand dtype; accumulation stays f32


def _round_up(x, m):
    return ((x + m - 1) // m) * m


def _layer_norm(x, g, b, d_true):
    # Padded feature columns of x are exactly zero, so plain sums over the
    # padded axis are correct as long as we divide by the TRUE feature count.
    inv_d = jnp.float32(1.0 / d_true)
    mu = jnp.sum(x, axis=-1, keepdims=True) * inv_d
    ex2 = jnp.sum(x * x, axis=-1, keepdims=True) * inv_d
    var = jnp.maximum(ex2 - mu * mu, 0.0)
    # unbiased std, (z - mu) / (sigma + eps), like the repo's LayerNormalization
    sigma = jnp.sqrt(var * jnp.float32(d_true / (d_true - 1)))
    return (x - mu) / (sigma + jnp.float32(LN_EPS)) * g + b


def make_encoder_kernel(n_head, dkp, dvp, d_model):
    def kernel(x_ref, bias_ref,
               wqkv_ref, wo_ref, bo_ref, ln1g_ref, ln1b_ref,
               w1_ref, b1_ref, w2_ref, b2_ref, ln2g_ref, ln2b_ref,
               out_ref):
        # Seed the VMEM-resident activation block from the embedding at layer 0.
        @pl.when(pl.program_id(1) == 0)
        def _():
            out_ref[...] = x_ref[...]

        x_bf = out_ref[0]                       # (Lp, Dp) bf16, resident across layers
        x = x_bf.astype(jnp.float32)            # f32 copy for residual / LayerNorm
        bias = bias_ref[0]                      # (1, Lp) additive key-pad bias

        # ---- fused Q/K/V projection (1/sqrt(d_k) folded into the Q weights) ----
        qkv = jnp.dot(x_bf, wqkv_ref[0],
                      preferred_element_type=jnp.float32).astype(MM_DTYPE)

        k_off = n_head * dkp
        v_off = 2 * n_head * dkp

        # ---- multi-head attention; heads emitted as 128-aligned lane blocks ----
        ctx_blocks = []
        for h in range(n_head):                 # tiny static unroll
            q = qkv[:, h * dkp:(h + 1) * dkp]
            k = qkv[:, k_off + h * dkp: k_off + (h + 1) * dkp]
            v = qkv[:, v_off + h * dvp: v_off + (h + 1) * dvp]

            s = jax.lax.dot_general(q, k, (((1,), (1,)), ((), ())),
                                    preferred_element_type=jnp.float32)
            s = s + bias                                        # mask PAD keys
            s = s - jnp.max(s, axis=-1, keepdims=True)
            e = jnp.exp(s)
            denom = jnp.sum(e, axis=-1, keepdims=True)
            # normalize AFTER the PV matmul: (Lp, dvp) multiplies, not (Lp, Lp)
            ctx = jnp.dot(e.astype(MM_DTYPE), v,
                          preferred_element_type=jnp.float32)
            ctx = ctx * pl.reciprocal(denom, approx=True)
            ctx_blocks.append(ctx.astype(MM_DTYPE))

        ctx_all = jnp.concatenate(ctx_blocks, axis=-1)          # (Lp, H*dvp)
        # single output projection, contraction K = H*dvp (MXU-friendly)
        proj = jnp.dot(ctx_all, wo_ref[0],
                       preferred_element_type=jnp.float32) + bo_ref[0]

        h1 = _layer_norm(proj + x, ln1g_ref[0], ln1b_ref[0], d_model)

        # ---- position-wise feed-forward (Conv1d k=1 == matmul) ----
        f = jnp.dot(h1.astype(MM_DTYPE), w1_ref[0],
                    preferred_element_type=jnp.float32) + b1_ref[0]
        f = jnp.maximum(f, 0.0)
        f = jnp.dot(f.astype(MM_DTYPE), w2_ref[0],
                    preferred_element_type=jnp.float32) + b2_ref[0]
        out = _layer_norm(f + h1, ln2g_ref[0], ln2b_ref[0], d_model)

        out_ref[0] = out.astype(out_ref.dtype)

    return kernel


_PARAM_ORDER = ('wqkv', 'wo', 'bo', 'ln1_g', 'ln1_b',
                'w1', 'b1', 'w2', 'b2', 'ln2_g', 'ln2_b')


def encoder_stack(x, attn_bias, stacked, cfg, n_layers):
    """x: (B, Lp, Dp) bf16, attn_bias: (B, 1, Lp) f32, stacked: per-key (n_layers, ...)."""
    B, Lp, Dp = x.shape
    kernel = make_encoder_kernel(cfg['n_head'], cfg['dkp'], cfg['dvp'], cfg['d_model'])

    def wspec(arr):
        nd = arr.ndim
        blk = (1,) + arr.shape[1:]
        return pl.BlockSpec(blk, lambda b, l, _nd=nd: (l,) + (0,) * (_nd - 1))

    in_specs = [
        pl.BlockSpec((1, Lp, Dp), lambda b, l: (b, 0, 0)),   # activations (constant over l)
        pl.BlockSpec((1, 1, Lp), lambda b, l: (b, 0, 0)),    # key-pad bias (constant over l)
    ] + [wspec(stacked[k]) for k in _PARAM_ORDER]

    return pl.pallas_call(
        kernel,
        out_shape=jax.ShapeDtypeStruct((B, Lp, Dp), x.dtype),
        grid=(B, n_layers),
        in_specs=in_specs,
        out_specs=pl.BlockSpec((1, Lp, Dp), lambda b, l: (b, 0, 0)),  # resident over l
        compiler_params=pltpu.CompilerParams(
            dimension_semantics=("parallel", "arbitrary"),
            vmem_limit_bytes=48 * 1024 * 1024,
        ),
    )(x, attn_bias, *[stacked[k] for k in _PARAM_ORDER])


def make_config(d_model, d_inner, n_head, d_k, d_v):
    return dict(d_model=d_model, d_inner=d_inner, n_head=n_head,
                d_k=d_k, d_v=d_v,
                dkp=_round_up(d_k, LANE), dvp=_round_up(d_v, LANE),
                d_model_pad=_round_up(d_model, LANE),
                d_inner_pad=_round_up(d_inner, LANE))


def init_layer_params(key, d_model, d_inner, n_head, d_k, d_v):
    """Raw (unpadded, f32) parameters, matching the PyTorch module layout."""
    ks = jax.random.split(key, 8)
    s = 0.1
    return {
        'wq': jax.random.normal(ks[0], (n_head, d_model, d_k), jnp.float32) * s,
        'wk': jax.random.normal(ks[1], (n_head, d_model, d_k), jnp.float32) * s,
        'wv': jax.random.normal(ks[2], (n_head, d_model, d_v), jnp.float32) * s,
        'wo': jax.random.normal(ks[3], (n_head * d_v, d_model), jnp.float32) * s,
        'bo': jnp.zeros((1, d_model), jnp.float32),
        'ln1_g': jnp.ones((1, d_model), jnp.float32),
        'ln1_b': jnp.zeros((1, d_model), jnp.float32),
        'w1': jax.random.normal(ks[4], (d_model, d_inner), jnp.float32) * s,
        'b1': jnp.zeros((1, d_inner), jnp.float32),
        'w2': jax.random.normal(ks[5], (d_inner, d_model), jnp.float32) * s,
        'b2': jnp.zeros((1, d_model), jnp.float32),
        'ln2_g': jnp.ones((1, d_model), jnp.float32),
        'ln2_b': jnp.zeros((1, d_model), jnp.float32),
    }


def prepare_layer_params(raw, cfg):
    """Pad to lane-friendly shapes, fold scale into Q, fuse QKV, flatten Wo, cast to bf16."""
    H, dk, dv = cfg['n_head'], cfg['d_k'], cfg['d_v']
    D = cfg['d_model']
    Dp, DIp = cfg['d_model_pad'], cfg['d_inner_pad']
    dkp, dvp = cfg['dkp'], cfg['dvp']
    scale = 1.0 / math.sqrt(dk)                 # folded into the Q weight columns

    def pad_to(a, shape):
        return jnp.pad(a, [(0, s - d) for d, s in zip(a.shape, shape)])

    def flat(w, dp):
        # (H, Dp, dp) -> (Dp, H*dp): head-major, 128-aligned column blocks
        return jnp.transpose(w, (1, 0, 2)).reshape(Dp, H * dp)

    wq = pad_to(raw['wq'] * scale, (H, Dp, dkp))
    wk = pad_to(raw['wk'], (H, Dp, dkp))
    wv = pad_to(raw['wv'], (H, Dp, dvp))
    wqkv = jnp.concatenate([flat(wq, dkp), flat(wk, dkp), flat(wv, dvp)],
                           axis=1).astype(MM_DTYPE)

    # (H*d_v, D) -> (H, d_v, D) -> pad -> (H*dvp, Dp): matches concatenated ctx lanes
    wo = pad_to(raw['wo'].reshape(H, dv, D), (H, dvp, Dp)).reshape(H * dvp, Dp)
    wo = wo.astype(MM_DTYPE)

    def vec(v, wp):
        return pad_to(v, (1, wp)).astype(jnp.float32)

    return {
        'wqkv': wqkv,
        'wo': wo,
        'bo': vec(raw['bo'], Dp),
        'ln1_g': vec(raw['ln1_g'], Dp),      # padded gamma = 0 keeps padded cols exactly 0
        'ln1_b': vec(raw['ln1_b'], Dp),
        'w1': pad_to(raw['w1'], (Dp, DIp)).astype(MM_DTYPE),
        'b1': vec(raw['b1'], DIp),
        'w2': pad_to(raw['w2'], (DIp, Dp)).astype(MM_DTYPE),
        'b2': vec(raw['b2'], Dp),
        'ln2_g': vec(raw['ln2_g'], Dp),
        'ln2_b': vec(raw['ln2_b'], Dp),
    }


def stack_layer_params(per_layer):
    """Stack per-layer prepared params with a leading layer dim for the fused grid."""
    return {k: jnp.stack([p[k] for p in per_layer], axis=0) for k in _PARAM_ORDER}


def encoder_forward(src_seq, src_pos, emb_table, stacked_params, cfg, n_layers):
    # src_pos is accepted but (as in the reference Encoder.forward) not used.
    del src_pos
    B, L = src_seq.shape
    D = emb_table.shape[1]
    Dp = cfg['d_model_pad']
    Lp = _round_up(L, SUBLANE_BF16)

    # embedding gather (glue, plain JAX); padding_idx row of emb_table is zeroed.
    enc = jnp.take(emb_table, src_seq, axis=0)                        # (B, L, D)
    enc = jnp.pad(enc, ((0, 0), (0, Lp - L), (0, Dp - D)))            # lane/sublane pad
    enc = enc.astype(MM_DTYPE)                                        # bf16 activations

    # get_attn_padding_mask(src_seq, src_seq) -> additive key bias, only (B,1,Lp)
    is_pad = jnp.pad(src_seq == PAD, ((0, 0), (0, Lp - L)), constant_values=True)
    attn_bias = jnp.where(is_pad, jnp.float32(NEG_INF), jnp.float32(0.0))[:, None, :]

    enc = encoder_stack(enc, attn_bias, stacked_params, cfg, n_layers)
    return (enc[:, :L, :D].astype(jnp.float32),)


if __name__ == "__main__":
    # Small, forward-consistent shapes (scaled-down from d_model=300, n_head=6, d_k=50)
    B, L = 2, 8
    D_MODEL = 16
    D_INNER = 32
    N_HEAD = 2
    D_K = D_V = 8
    N_LAYERS = 2
    VOCAB = 50

    key = jax.random.PRNGKey(0)
    k_seq, k_emb, k_layers = jax.random.split(key, 3)

    src_seq = jax.random.randint(k_seq, (B, L), 1, VOCAB, dtype=jnp.int32)
    src_seq = src_seq.at[:, -2:].set(PAD)                       # trailing padding tokens
    src_pos = jnp.broadcast_to(jnp.arange(L, dtype=jnp.int32), (B, L))

    emb_table = jax.random.normal(k_emb, (VOCAB, D_MODEL), jnp.float32) * 0.1
    emb_table = emb_table.at[PAD].set(0.0)                      # padding_idx=PAD

    cfg = make_config(D_MODEL, D_INNER, N_HEAD, D_K, D_V)
    layer_keys = jax.random.split(k_layers, N_LAYERS)
    per_layer = [
        prepare_layer_params(init_layer_params(k, D_MODEL, D_INNER, N_HEAD, D_K, D_V), cfg)
        for k in layer_keys
    ]
    stacked_params = stack_layer_params(per_layer)

    (enc_out,) = encoder_forward(src_seq, src_pos, emb_table, stacked_params, cfg, N_LAYERS)
    enc_out = jax.block_until_ready(enc_out)
    assert enc_out.shape == (B, L, D_MODEL)
    assert bool(jnp.all(jnp.isfinite(enc_out)))
    print("KERNEL_OK")
</pallas_src>

<mosaic_0001>
module attributes {stable_mosaic.version = 11 : i64} {
  func.func @kernel(%arg0: i32, %arg1: i32, %arg2: memref<1x16x128xbf16, #tpu.memory_space<vmem>>, %arg3: memref<1x1x16xf32, #tpu.memory_space<vmem>>, %arg4: memref<1x128x768xbf16, #tpu.memory_space<vmem>>, %arg5: memref<1x256x128xbf16, #tpu.memory_space<vmem>>, %arg6: memref<1x1x128xf32, #tpu.memory_space<vmem>>, %arg7: memref<1x1x128xf32, #tpu.memory_space<vmem>>, %arg8: memref<1x1x128xf32, #tpu.memory_space<vmem>>, %arg9: memref<1x128x128xbf16, #tpu.memory_space<vmem>>, %arg10: memref<1x1x128xf32, #tpu.memory_space<vmem>>, %arg11: memref<1x128x128xbf16, #tpu.memory_space<vmem>>, %arg12: memref<1x1x128xf32, #tpu.memory_space<vmem>>, %arg13: memref<1x1x128xf32, #tpu.memory_space<vmem>>, %arg14: memref<1x1x128xf32, #tpu.memory_space<vmem>>, %arg15: memref<1x16x128xbf16, #tpu.memory_space<vmem>>) attributes {dimension_semantics = [#tpu.dimension_semantics<parallel>, #tpu.dimension_semantics<arbitrary>], iteration_bounds = array<i64: 2, 2>, scalar_prefetch = 0 : i64, scratch_operands = 0 : i64, tpu.core_type = #tpu.core_type<tc>, window_params = [{transform_indices = @transform_0, window_bounds = array<i64: 1, 16, 128>}, {transform_indices = @transform_1, window_bounds = array<i64: 1, 1, 16>}, {transform_indices = @transform_2, window_bounds = array<i64: 1, 128, 768>}, {transform_indices = @transform_3, window_bounds = array<i64: 1, 256, 128>}, {transform_indices = @transform_4, window_bounds = array<i64: 1, 1, 128>}, {transform_indices = @transform_5, window_bounds = array<i64: 1, 1, 128>}, {transform_indices = @transform_6, window_bounds = array<i64: 1, 1, 128>}, {transform_indices = @transform_7, window_bounds = array<i64: 1, 128, 128>}, {transform_indices = @transform_8, window_bounds = array<i64: 1, 1, 128>}, {transform_indices = @transform_9, window_bounds = array<i64: 1, 128, 128>}, {transform_indices = @transform_10, window_bounds = array<i64: 1, 1, 128>}, {transform_indices = @transform_11, window_bounds = array<i64: 1, 1, 128>}, {transform_indices = @transform_12, window_bounds = array<i64: 1, 1, 128>}, {transform_indices = @transform_13, window_bounds = array<i64: 1, 16, 128>}]} {
    %c0_i32 = arith.constant 0 : i32
    %0 = arith.cmpi eq, %arg1, %c0_i32 : i32
    %1 = arith.extui %0 : i1 to i32
    %c0_i32_0 = arith.constant 0 : i32
    %2 = arith.cmpi ne, %1, %c0_i32_0 : i32
    scf.if %2 {
      %c0_68 = arith.constant 0 : index
      %c0_69 = arith.constant 0 : index
      %c0_70 = arith.constant 0 : index
      %142 = vector.load %arg2[%c0_68, %c0_69, %c0_70] : memref<1x16x128xbf16, #tpu.memory_space<vmem>>, vector<1x16x128xbf16>
      %c0_71 = arith.constant 0 : index
      %c0_72 = arith.constant 0 : index
      %c0_73 = arith.constant 0 : index
      %143 = vector.load %arg15[%c0_71, %c0_72, %c0_73] : memref<1x16x128xbf16, #tpu.memory_space<vmem>>, vector<1x16x128xbf16>
      tpu.vector_store %arg15[%c0_71, %c0_72, %c0_73], %142 {strides = array<i32>} : memref<1x16x128xbf16, #tpu.memory_space<vmem>>, vector<1x16x128xbf16>,
    } else {
    }
    %c0 = arith.constant 0 : index
    %c0_1 = arith.constant 0 : index
    %c0_2 = arith.constant 0 : index
    %3 = vector.load %arg15[%c0, %c0_1, %c0_2] : memref<1x16x128xbf16, #tpu.memory_space<vmem>>, vector<1x16x128xbf16>
    %4 = vector.shape_cast %3 : vector<1x16x128xbf16> to vector<16x128xbf16>
    %5 = arith.extf %4 : vector<16x128xbf16> to vector<16x128xf32>
    %c0_3 = arith.constant 0 : index
    %c0_4 = arith.constant 0 : index
    %c0_5 = arith.constant 0 : index
    %6 = vector.load %arg3[%c0_3, %c0_4, %c0_5] : memref<1x1x16xf32, #tpu.memory_space<vmem>>, vector<1x1x16xf32>
    %7 = vector.shape_cast %6 : vector<1x1x16xf32> to vector<1x16xf32>
    %c0_6 = arith.constant 0 : index
    %c0_7 = arith.constant 0 : index
    %c0_8 = arith.constant 0 : index
    %8 = vector.load %arg4[%c0_6, %c0_7, %c0_8] : memref<1x128x768xbf16, #tpu.memory_space<vmem>>, vector<1x128x768xbf16>
    %9 = vector.shape_cast %8 : vector<1x128x768xbf16> to vector<128x768xbf16>
    %cst = arith.constant dense<0.000000e+00> : vector<16x768xf32>
    %10 = tpu.matmul %4, %9, %cst {dimension_numbers = #tpu.dot_dimension_numbers<[1], [0], [0], [1], [0, 0, 1, 1], [], []>} : vector<16x128xbf16>, vector<128x768xbf16>, vector<16x768xf32> -> vector<16x768xf32>
    %11 = arith.truncf %10 : vector<16x768xf32> to vector<16x768xbf16>
    %12 = vector.extract_strided_slice %11 {offsets = [0, 0], sizes = [16, 128], strides = [1, 1]} : vector<16x768xbf16> to vector<16x128xbf16>
    %13 = vector.extract_strided_slice %11 {offsets = [0, 256], sizes = [16, 128], strides = [1, 1]} : vector<16x768xbf16> to vector<16x128xbf16>
    %14 = vector.extract_strided_slice %11 {offsets = [0, 512], sizes = [16, 128], strides = [1, 1]} : vector<16x768xbf16> to vector<16x128xbf16>
    %cst_9 = arith.constant dense<0.000000e+00> : vector<16x16xf32>
    %15 = tpu.matmul %12, %13, %cst_9 {dimension_numbers = #tpu.dot_dimension_numbers<[1], [1], [0], [0], [0, 0, 1, 0], [], []>} : vector<16x128xbf16>, vector<16x128xbf16>, vector<16x16xf32> -> vector<16x16xf32>
    %16 = vector.broadcast %7 : vector<1x16xf32> to vector<16x16xf32>
    %17 = arith.addf %15, %16 : vector<16x16xf32>
    %cst_10 = arith.constant dense<0xFF800000> : vector<16xf32>
    %18 = vector.multi_reduction <maximumf>, %17, %cst_10 [1] : vector<16x16xf32> to vector<16xf32>
    %19 = vector.shape_cast %18 : vector<16xf32> to vector<16x1xf32>
    %20 = vector.broadcast %19 : vector<16x1xf32> to vector<16x16xf32>
    %21 = arith.subf %17, %20 : vector<16x16xf32>
    %22 = math.exp %21 : vector<16x16xf32>
    %cst_11 = arith.constant dense<0.000000e+00> : vector<16xf32>
    %23 = vector.multi_reduction <add>, %22, %cst_11 [1] : vector<16x16xf32> to vector<16xf32>
    %24 = vector.shape_cast %23 : vector<16xf32> to vector<16x1xf32>
    %25 = arith.truncf %22 : vector<16x16xf32> to vector<16x16xbf16>
    %cst_12 = arith.constant dense<0.000000e+00> : vector<16x128xf32>
    %26 = tpu.matmul %25, %14, %cst_12 {dimension_numbers = #tpu.dot_dimension_numbers<[1], [0], [0], [1], [0, 0, 1, 1], [], []>} : vector<16x16xbf16>, vector<16x128xbf16>, vector<16x128xf32> -> vector<16x128xf32>
    %27 = tpu.reciprocal %24 {approx = true} : vector<16x1xf32> -> vector<16x1xf32>
    %28 = vector.broadcast %27 : vector<16x1xf32> to vector<16x128xf32>
    %29 = arith.mulf %26, %28 : vector<16x128xf32>
    %30 = arith.truncf %29 : vector<16x128xf32> to vector<16x128xbf16>
    %31 = vector.extract_strided_slice %11 {offsets = [0, 128], sizes = [16, 128], strides = [1, 1]} : vector<16x768xbf16> to vector<16x128xbf16>
    %32 = vector.extract_strided_slice %11 {offsets = [0, 384], sizes = [16, 128], strides = [1, 1]} : vector<16x768xbf16> to vector<16x128xbf16>
    %33 = vector.extract_strided_slice %11 {offsets = [0, 640], sizes = [16, 128], strides = [1, 1]} : vector<16x768xbf16> to vector<16x128xbf16>
    %cst_13 = arith.constant dense<0.000000e+00> : vector<16x16xf32>
    %34 = tpu.matmul %31, %32, %cst_13 {dimension_numbers = #tpu.dot_dimension_numbers<[1], [1], [0], [0], [0, 0, 1, 0], [], []>} : vector<16x128xbf16>, vector<16x128xbf16>, vector<16x16xf32> -> vector<16x16xf32>
    %35 = vector.broadcast %7 : vector<1x16xf32> to vector<16x16xf32>
    %36 = arith.addf %34, %35 : vector<16x16xf32>
    %cst_14 = arith.constant dense<0xFF800000> : vector<16xf32>
    %37 = vector.multi_reduction <maximumf>, %36, %cst_14 [1] : vector<16x16xf32> to vector<16xf32>
    %38 = vector.shape_cast %37 : vector<16xf32> to vector<16x1xf32>
    %39 = vector.broadcast %38 : vector<16x1xf32> to vector<16x16xf32>
    %40 = arith.subf %36, %39 : vector<16x16xf32>
    %41 = math.exp %40 : vector<16x16xf32>
    %cst_15 = arith.constant dense<0.000000e+00> : vector<16xf32>
    %42 = vector.multi_reduction <add>, %41, %cst_15 [1] : vector<16x16xf32> to vector<16xf32>
    %43 = vector.shape_cast %42 : vector<16xf32> to vector<16x1xf32>
    %44 = arith.truncf %41 : vector<16x16xf32> to vector<16x16xbf16>
    %cst_16 = arith.constant dense<0.000000e+00> : vector<16x128xf32>
    %45 = tpu.matmul %44, %33, %cst_16 {dimension_numbers = #tpu.dot_dimension_numbers<[1], [0], [0], [1], [0, 0, 1, 1], [], []>} : vector<16x16xbf16>, vector<16x128xbf16>, vector<16x128xf32> -> vector<16x128xf32>
    %46 = tpu.reciprocal %43 {approx = true} : vector<16x1xf32> -> vector<16x1xf32>
    %47 = vector.broadcast %46 : vector<16x1xf32> to vector<16x128xf32>
    %48 = arith.mulf %45, %47 : vector<16x128xf32>
    %49 = arith.truncf %48 : vector<16x128xf32> to vector<16x128xbf16>
    %50 = tpu.concatenate %30, %49 in 1 : vector<16x128xbf16>, vector<16x128xbf16> -> vector<16x256xbf16>
    %c0_17 = arith.constant 0 : index
    %c0_18 = arith.constant 0 : index
    %c0_19 = arith.constant 0 : index
    %51 = vector.load %arg5[%c0_17, %c0_18, %c0_19] : memref<1x256x128xbf16, #tpu.memory_space<vmem>>, vector<1x256x128xbf16>
    %52 = vector.shape_cast %51 : vector<1x256x128xbf16> to vector<256x128xbf16>
    %cst_20 = arith.constant dense<0.000000e+00> : vector<16x128xf32>
    %53 = tpu.matmul %50, %52, %cst_20 {dimension_numbers = #tpu.dot_dimension_numbers<[1], [0], [0], [1], [0, 0, 1, 1], [], []>} : vector<16x256xbf16>, vector<256x128xbf16>, vector<16x128xf32> -> vector<16x128xf32>
    %c0_21 = arith.constant 0 : index
    %c0_22 = arith.constant 0 : index
    %c0_23 = arith.constant 0 : index
    %54 = vector.load %arg6[%c0_21, %c0_22, %c0_23] : memref<1x1x128xf32, #tpu.memory_space<vmem>>, vector<1x1x128xf32>
    %55 = vector.shape_cast %54 : vector<1x1x128xf32> to vector<1x128xf32>
    %56 = vector.broadcast %55 : vector<1x128xf32> to vector<16x128xf32>
    %57 = arith.addf %53, %56 : vector<16x128xf32>
    %58 = arith.addf %57, %5 : vector<16x128xf32>
    %c0_24 = arith.constant 0 : index
    %c0_25 = arith.constant 0 : index
    %c0_26 = arith.constant 0 : index
    %59 = vector.load %arg7[%c0_24, %c0_25, %c0_26] : memref<1x1x128xf32, #tpu.memory_space<vmem>>, vector<1x1x128xf32>
    %60 = vector.shape_cast %59 : vector<1x1x128xf32> to vector<1x128xf32>
    %c0_27 = arith.constant 0 : index
    %c0_28 = arith.constant 0 : index
    %c0_29 = arith.constant 0 : index
    %61 = vector.load %arg8[%c0_27, %c0_28, %c0_29] : memref<1x1x128xf32, #tpu.memory_space<vmem>>, vector<1x1x128xf32>
    %62 = vector.shape_cast %61 : vector<1x1x128xf32> to vector<1x128xf32>
    %cst_30 = arith.constant dense<0.000000e+00> : vector<16xf32>
    %63 = vector.multi_reduction <add>, %58, %cst_30 [1] : vector<16x128xf32> to vector<16xf32>
    %64 = vector.shape_cast %63 : vector<16xf32> to vector<16x1xf32>
    %cst_31 = arith.constant 6.250000e-02 : f32
    %65 = vector.broadcast %cst_31 : f32 to vector<16x1xf32>
    %66 = arith.mulf %64, %65 : vector<16x1xf32>
    %67 = arith.mulf %58, %58 : vector<16x128xf32>
    %cst_32 = arith.constant dense<0.000000e+00> : vector<16xf32>
    %68 = vector.multi_reduction <add>, %67, %cst_32 [1] : vector<16x128xf32> to vector<16xf32>
    %69 = vector.shape_cast %68 : vector<16xf32> to vector<16x1xf32>
    %cst_33 = arith.constant 6.250000e-02 : f32
    %70 = vector.broadcast %cst_33 : f32 to vector<16x1xf32>
    %71 = arith.mulf %69, %70 : vector<16x1xf32>
    %72 = arith.mulf %66, %66 : vector<16x1xf32>
    %73 = arith.subf %71, %72 : vector<16x1xf32>
    %cst_34 = arith.constant 0.000000e+00 : f32
    %74 = vector.broadcast %cst_34 : f32 to vector<16x1xf32>
    %75 = arith.maximumf %73, %74 : vector<16x1xf32>
    %cst_35 = arith.constant 1.06666672 : f32
    %76 = vector.broadcast %cst_35 : f32 to vector<16x1xf32>
    %77 = arith.mulf %75, %76 : vector<16x1xf32>
    %78 = math.sqrt %77 : vector<16x1xf32>
    %79 = vector.broadcast %66 : vector<16x1xf32> to vector<16x128xf32>
    %80 = arith.subf %58, %79 : vector<16x128xf32>
    %cst_36 = arith.constant 1.000000e-03 : f32
    %81 = vector.broadcast %cst_36 : f32 to vector<16x1xf32>
    %82 = arith.addf %78, %81 : vector<16x1xf32>
    %83 = vector.broadcast %82 : vector<16x1xf32> to vector<16x128xf32>
    %84 = arith.divf %80, %83 : vector<16x128xf32>
    %85 = vector.broadcast %60 : vector<1x128xf32> to vector<16x128xf32>
    %86 = arith.mulf %84, %85 : vector<16x128xf32>
    %87 = vector.broadcast %62 : vector<1x128xf32> to vector<16x128xf32>
    %88 = arith.addf %86, %87 : vector<16x128xf32>
    %89 = arith.truncf %88 : vector<16x128xf32> to vector<16x128xbf16>
    %c0_37 = arith.constant 0 : index
    %c0_38 = arith.constant 0 : index
    %c0_39 = arith.constant 0 : index
    %90 = vector.load %arg9[%c0_37, %c0_38, %c0_39] : memref<1x128x128xbf16, #tpu.memory_space<vmem>>, vector<1x128x128xbf16>
    %91 = vector.shape_cast %90 : vector<1x128x128xbf16> to vector<128x128xbf16>
    %cst_40 = arith.constant dense<0.000000e+00> : vector<16x128xf32>
    %92 = tpu.matmul %89, %91, %cst_40 {dimension_numbers = #tpu.dot_dimension_numbers<[1], [0], [0], [1], [0, 0, 1, 1], [], []>} : vector<16x128xbf16>, vector<128x128xbf16>, vector<16x128xf32> -> vector<16x128xf32>
    %c0_41 = arith.constant 0 : index
    %c0_42 = arith.constant 0 : index
    %c0_43 = arith.constant 0 : index
    %93 = vector.load %arg10[%c0_41, %c0_42, %c0_43] : memref<1x1x128xf32, #tpu.memory_space<vmem>>, vector<1x1x128xf32>
    %94 = vector.shape_cast %93 : vector<1x1x128xf32> to vector<1x128xf32>
    %95 = vector.broadcast %94 : vector<1x128xf32> to vector<16x128xf32>
    %96 = arith.addf %92, %95 : vector<16x128xf32>
    %cst_44 = arith.constant 0.000000e+00 : f32
    %97 = vector.broadcast %cst_44 : f32 to vector<16x128xf32>
    %98 = arith.maximumf %96, %97 : vector<16x128xf32>
    %99 = arith.truncf %98 : vector<16x128xf32> to vector<16x128xbf16>
    %c0_45 = arith.constant 0 : index
    %c0_46 = arith.constant 0 : index
    %c0_47 = arith.constant 0 : index
    %100 = vector.load %arg11[%c0_45, %c0_46, %c0_47] : memref<1x128x128xbf16, #tpu.memory_space<vmem>>, vector<1x128x128xbf16>
    %101 = vector.shape_cast %100 : vector<1x128x128xbf16> to vector<128x128xbf16>
    %cst_48 = arith.constant dense<0.000000e+00> : vector<16x128xf32>
    %102 = tpu.matmul %99, %101, %cst_48 {dimension_numbers = #tpu.dot_dimension_numbers<[1], [0], [0], [1], [0, 0, 1, 1], [], []>} : vector<16x128xbf16>, vector<128x128xbf16>, vector<16x128xf32> -> vector<16x128xf32>
    %c0_49 = arith.constant 0 : index
    %c0_50 = arith.constant 0 : index
    %c0_51 = arith.constant 0 : index
    %103 = vector.load %arg12[%c0_49, %c0_50, %c0_51] : memref<1x1x128xf32, #tpu.memory_space<vmem>>, vector<1x1x128xf32>
    %104 = vector.shape_cast %103 : vector<1x1x128xf32> to vector<1x128xf32>
    %105 = vector.broadcast %104 : vector<1x128xf32> to vector<16x128xf32>
    %106 = arith.addf %102, %105 : vector<16x128xf32>
    %107 = arith.addf %106, %88 : vector<16x128xf32>
    %c0_52 = arith.constant 0 : index
    %c0_53 = arith.constant 0 : index
    %c0_54 = arith.constant 0 : index
    %108 = vector.load %arg13[%c0_52, %c0_53, %c0_54] : memref<1x1x128xf32, #tpu.memory_space<vmem>>, vector<1x1x128xf32>
    %109 = vector.shape_cast %108 : vector<1x1x128xf32> to vector<1x128xf32>
    %c0_55 = arith.constant 0 : index
    %c0_56 = arith.constant 0 : index
    %c0_57 = arith.constant 0 : index
    %110 = vector.load %arg14[%c0_55, %c0_56, %c0_57] : memref<1x1x128xf32, #tpu.memory_space<vmem>>, vector<1x1x128xf32>
    %111 = vector.shape_cast %110 : vector<1x1x128xf32> to vector<1x128xf32>
    %cst_58 = arith.constant dense<0.000000e+00> : vector<16xf32>
    %112 = vector.multi_reduction <add>, %107, %cst_58 [1] : vector<16x128xf32> to vector<16xf32>
    %113 = vector.shape_cast %112 : vector<16xf32> to vector<16x1xf32>
    %cst_59 = arith.constant 6.250000e-02 : f32
    %114 = vector.broadcast %cst_59 : f32 to vector<16x1xf32>
    %115 = arith.mulf %113, %114 : vector<16x1xf32>
    %116 = arith.mulf %107, %107 : vector<16x128xf32>
    %cst_60 = arith.constant dense<0.000000e+00> : vector<16xf32>
    %117 = vector.multi_reduction <add>, %116, %cst_60 [1] : vector<16x128xf32> to vector<16xf32>
    %118 = vector.shape_cast %117 : vector<16xf32> to vector<16x1xf32>
    %cst_61 = arith.constant 6.250000e-02 : f32
    %119 = vector.broadcast %cst_61 : f32 to vector<16x1xf32>
    %120 = arith.mulf %118, %119 : vector<16x1xf32>
    %121 = arith.mulf %115, %115 : vector<16x1xf32>
    %122 = arith.subf %120, %121 : vector<16x1xf32>
    %cst_62 = arith.constant 0.000000e+00 : f32
    %123 = vector.broadcast %cst_62 : f32 to vector<16x1xf32>
    %124 = arith.maximumf %122, %123 : vector<16x1xf32>
    %cst_63 = arith.constant 1.06666672 : f32
    %125 = vector.broadcast %cst_63 : f32 to vector<16x1xf32>
    %126 = arith.mulf %124, %125 : vector<16x1xf32>
    %127 = math.sqrt %126 : vector<16x1xf32>
    %128 = vector.broadcast %115 : vector<16x1xf32> to vector<16x128xf32>
    %129 = arith.subf %107, %128 : vector<16x128xf32>
    %cst_64 = arith.constant 1.000000e-03 : f32
    %130 = vector.broadcast %cst_64 : f32 to vector<16x1xf32>
    %131 = arith.addf %127, %130 : vector<16x1xf32>
    %132 = vector.broadcast %131 : vector<16x1xf32> to vector<16x128xf32>
    %133 = arith.divf %129, %132 : vector<16x128xf32>
    %134 = vector.broadcast %109 : vector<1x128xf32> to vector<16x128xf32>
    %135 = arith.mulf %133, %134 : vector<16x128xf32>
    %136 = vector.broadcast %111 : vector<1x128xf32> to vector<16x128xf32>
    %137 = arith.addf %135, %136 : vector<16x128xf32>
    %138 = arith.truncf %137 : vector<16x128xf32> to vector<16x128xbf16>
    %c0_65 = arith.constant 0 : index
    %c0_66 = arith.constant 0 : index
    %c0_67 = arith.constant 0 : index
    %139 = vector.load %arg15[%c0_65, %c0_66, %c0_67] : memref<1x16x128xbf16, #tpu.memory_space<vmem>>, vector<1x16x128xbf16>
    %140 = vector.shape_cast %139 : vector<1x16x128xbf16> to vector<16x128xbf16>
    %141 = vector.shape_cast %138 : vector<16x128xbf16> to vector<1x16x128xbf16>
    tpu.vector_store %arg15[%c0_65, %c0_66, %c0_67], %141 {strides = array<i32>} : memref<1x16x128xbf16, #tpu.memory_space<vmem>>, vector<1x16x128xbf16>,
    return
  }
  func.func @transform_0(%arg0: i32, %arg1: i32) -> (i32, i32, i32) {
    %c0_i32 = arith.constant 0 : i32
    %c0_i32_0 = arith.constant 0 : i32
    %c0_i32_1 = arith.constant 0 : i32
    return %arg0, %c0_i32, %c0_i32_0 : i32, i32, i32
  }
  func.func @transform_1(%arg0: i32, %arg1: i32) -> (i32, i32, i32) {
    %c0_i32 = arith.constant 0 : i32
    %c0_i32_0 = arith.constant 0 : i32
    %c0_i32_1 = arith.constant 0 : i32
    return %arg0, %c0_i32, %c0_i32_0 : i32, i32, i32
  }
  func.func @transform_2(%arg0: i32, %arg1: i32) -> (i32, i32, i32) {
    %c0_i32 = arith.constant 0 : i32
    %c0_i32_0 = arith.constant 0 : i32
    %c0_i32_1 = arith.constant 0 : i32
    return %arg1, %c0_i32, %c0_i32_0 : i32, i32, i32
  }
  func.func @transform_3(%arg0: i32, %arg1: i32) -> (i32, i32, i32) {
    %c0_i32 = arith.constant 0 : i32
    %c0_i32_0 = arith.constant 0 : i32
    %c0_i32_1 = arith.constant 0 : i32
    return %arg1, %c0_i32, %c0_i32_0 : i32, i32, i32
  }
  func.func @transform_4(%arg0: i32, %arg1: i32) -> (i32, i32, i32) {
    %c0_i32 = arith.constant 0 : i32
    %c0_i32_0 = arith.constant 0 : i32
    %c0_i32_1 = arith.constant 0 : i32
    return %arg1, %c0_i32, %c0_i32_0 : i32, i32, i32
  }
  func.func @transform_5(%arg0: i32, %arg1: i32) -> (i32, i32, i32) {
    %c0_i32 = arith.constant 0 : i32
    %c0_i32_0 = arith.constant 0 : i32
    %c0_i32_1 = arith.constant 0 : i32
    return %arg1, %c0_i32, %c0_i32_0 : i32, i32, i32
  }
  func.func @transform_6(%arg0: i32, %arg1: i32) -> (i32, i32, i32) {
    %c0_i32 = arith.constant 0 : i32
    %c0_i32_0 = arith.constant 0 : i32
    %c0_i32_1 = arith.constant 0 : i32
    return %arg1, %c0_i32, %c0_i32_0 : i32, i32, i32
  }
  func.func @transform_7(%arg0: i32, %arg1: i32) -> (i32, i32, i32) {
    %c0_i32 = arith.constant 0 : i32
    %c0_i32_0 = arith.constant 0 : i32
    %c0_i32_1 = arith.constant 0 : i32
    return %arg1, %c0_i32, %c0_i32_0 : i32, i32, i32
  }
  func.func @transform_8(%arg0: i32, %arg1: i32) -> (i32, i32, i32) {
    %c0_i32 = arith.constant 0 : i32
    %c0_i32_0 = arith.constant 0 : i32
    %c0_i32_1 = arith.constant 0 : i32
    return %arg1, %c0_i32, %c0_i32_0 : i32, i32, i32
  }
  func.func @transform_9(%arg0: i32, %arg1: i32) -> (i32, i32, i32) {
    %c0_i32 = arith.constant 0 : i32
    %c0_i32_0 = arith.constant 0 : i32
    %c0_i32_1 = arith.constant 0 : i32
    return %arg1, %c0_i32, %c0_i32_0 : i32, i32, i32
  }
  func.func @transform_10(%arg0: i32, %arg1: i32) -> (i32, i32, i32) {
    %c0_i32 = arith.constant 0 : i32
    %c0_i32_0 = arith.constant 0 : i32
    %c0_i32_1 = arith.constant 0 : i32
    return %arg1, %c0_i32, %c0_i32_0 : i32, i32, i32
  }
  func.func @transform_11(%arg0: i32, %arg1: i32) -> (i32, i32, i32) {
    %c0_i32 = arith.constant 0 : i32
    %c0_i32_0 = arith.constant 0 : i32
    %c0_i32_1 = arith.constant 0 : i32
    return %arg1, %c0_i32, %c0_i32_0 : i32, i32, i32
  }
  func.func @transform_12(%arg0: i32, %arg1: i32) -> (i32, i32, i32) {
    %c0_i32 = arith.constant 0 : i32
    %c0_i32_0 = arith.constant 0 : i32
    %c0_i32_1 = arith.constant 0 : i32
    return %arg1, %c0_i32, %c0_i32_0 : i32, i32, i32
  }
  func.func @transform_13(%arg0: i32, %arg1: i32) -> (i32, i32, i32) {
    %c0_i32 = arith.constant 0 : i32
    %c0_i32_0 = arith.constant 0 : i32
    %c0_i32_1 = arith.constant 0 : i32
    return %arg0, %c0_i32, %c0_i32_0 : i32, i32, i32
  }
}

</mosaic_0001>

<bundles_post_ra>
// kernel: tpu_custom_call.1
= control target key start
LH: loop header
LB: loop body
LE: loop exit
PB: predicated region body
PF: predicated region fallthrough
CT: control target
= control target key end

     0   :  { %s3776_s0 = inlined_call_operand.hbm [shape: bf16[2,16,128], index: 0, kind: input, shape index: {}]   ;;  %s3777_s1 = inlined_call_operand.vmem [shape: f32[2,1,16], index: 1, kind: input, shape index: {}]   ;;  %s3778_s2 = inlined_call_operand.hbm [shape: bf16[2,128,768], index: 2, kind: input, shape index: {}]   ;;  %s3779_s3 = inlined_call_operand.hbm [shape: bf16[2,256,128], index: 3, kind: input, shape index: {}]   ;;  %s3780_s4 = inlined_call_operand.vmem [shape: f32[2,1,128], index: 4, kind: input, shape index: {}]   ;;  %s3781_s5 = inlined_call_operand.vmem [shape: f32[2,1,128], index: 5, kind: input, shape index: {}]   ;;  %s3782_s6 = inlined_call_operand.vmem [shape: f32[2,1,128], index: 6, kind: input, shape index: {}]   ;;  %s3783_s7 = inlined_call_operand.hbm [shape: bf16[2,128,128], index: 7, kind: input, shape index: {}]   ;;  %s3784_s8 = inlined_call_operand.vmem [shape: f32[2,1,128], index: 8, kind: input, shape index: {}]   ;;  %s3785_s9 = inlined_call_operand.hbm [shape: bf16[2,128,128], index: 9, kind: input, shape index: {}]   ;;  %s3786_s10 = inlined_call_operand.vmem [shape: f32[2,1,128], index: 10, kind: input, shape index: {}]   ;;  %s3787_s11 = inlined_call_operand.vmem [shape: f32[2,1,128], index: 11, kind: input, shape index: {}]   ;;  %s3788_s12 = inlined_call_operand.vmem [shape: f32[2,1,128], index: 12, kind: input, shape index: {}]   ;;  %s3789_s13 = inlined_call_operand.hbm [shape: bf16[2,16,128], index: 13, kind: output, shape index: {}]  }
   0x1   :  { %3824 = sst [smem:[#allocation34_spill]] %s3776_s0 }
   0x2   :  { %3825 = sst [smem:[#allocation35_spill]] %s3777_s1 }
   0x3   :  { %3826 = sst [smem:[#allocation36_spill]] %s3778_s2 }
   0x4   :  { %3827 = sst [smem:[#allocation37_spill]] %s3779_s3 }
   0x5   :  { %3828 = sst [smem:[#allocation38_spill]] %s3780_s4 }
   0x6   :  { %3829 = sst [smem:[#allocation39_spill]] %s3781_s5 }
   0x7   :  { %3830 = sst [smem:[#allocation40_spill]] %s3782_s6 }
   0x8   :  { %3831 = sst [smem:[#allocation41_spill]] %s3783_s7 }
   0x9   :  { %3832 = sst [smem:[#allocation42_spill]] %s3784_s8 }
   0xa   :  { %3833 = sst [smem:[#allocation43_spill]] %s3785_s9 }
   0xb   :  { %3834 = sst [smem:[#allocation44_spill]] %s3786_s10 }
   0xc   :  { %3835 = sst [smem:[#allocation45_spill]] %s3787_s11 }
   0xd   :  { %3836 = sst [smem:[#allocation46_spill]] %s3788_s12 }
   0xe   :  { %3837 = sst [smem:[#allocation47_spill]] %s3789_s13 }
   0xf   :  { %18 = vsyncpa [#allocation3], 0 }
  0x10   :  { %20 = vsyncpa [#allocation3 + $0x1], 0 }
  0x11   :  { %21 = vsyncpa [#allocation6], 0 }
  0x12   :  { %23 = vsyncpa [#allocation6 + $0x1], 0 }
  0x13   :  { %24 = vsyncpa [#allocation9], 0 }
  0x14   :  { %26 = vsyncpa [#allocation9 + $0x1], 0 }
  0x15   :  { %27 = vsyncpa [#allocation4], 0 }
  0x16   :  { %29 = vsyncpa [#allocation4 + $0x1], 0  ;;  %s3088_s25 = smov 0   ;;  %s3090_s26 = smov 0  }
  0x17   :  { %s3092_s27 = smov 0   ;;  %s3094_s28 = smov 0  }
  0x18   :  { %s3096_s29 = smov 0   ;;  %s3098_s30 = smov 0  }
  0x19   :  { %s3100_s14 = smov 0   ;;  %s3102_s15 = smov 0  }
  0x1a   :  { %s3104_s16 = smov 0   ;;  %s3106_s17 = smov 0  }
  0x1b   :  { %s3108_s18 = smov 0  }
  0x1c LB: > { %3838 = sst [smem:[#allocation16_spill]] %s2965_s26  ;;  %s44_s19 = sadd.s32 1, %s2993_s16  ;;  %s3001_s18 = sphi %s3108_s18, %s35_s18   ;;  %s2997_s17 = sphi %s3106_s17, %s3924_s17   ;;  %s2993_s16 = sphi %s3104_s16, %s3923_s16   ;;  %s2989_s15 = sphi %s3102_s15, %s3922_s15   ;;  %s2985_s14 = sphi %s3100_s14, %s3921_s14   ;;  %s2981_s30 = sphi %s3098_s30, %s3920_s30   ;;  %s2977_s29 = sphi %s3096_s29, %s3919_s29   ;;  %s2973_s28 = sphi %s3094_s28, %s3918_s28   ;;  %s2969_s27 = sphi %s3092_s27, %s3917_s27   ;;  %s2965_s26 = sphi %s3090_s26, %s3916_s26   ;;  %s2961_s25 = sphi %s3088_s25, %s3915_s25  }
  0x1d   : > { %3839 = sst [smem:[#allocation17_spill]] %s2969_s27  ;;  %p3795_p0 = scmp.eq.s32.totalorder %s3001_s18, 0 }
  0x1e   : > { %3840 = sst [smem:[#allocation18_spill]] %s2973_s28  ;;  %p3145_p1 = scmp.ge.s32.totalorder %s44_s19, 2 }
  0x1f   : > { %3841 = sst [smem:[#allocation19_spill]] %s2977_s29  ;;  %s106_s21 = sadd.s32 1, %s2969_s27 }
  0x20   : > { %3842 = sst [smem:[#allocation20_spill]] %s2981_s30  ;;  %p113_p2 = scmp.ne.s32.totalorder %s2969_s27, %s2965_s26 }
  0x21   : > { %3843 = sst [smem:[#allocation21_spill]] %s2985_s14  ;;  %s3926_s19 = smov (%p3145_p1, %s44_s19), 0 }
  0x22   : > { %3844 = sst [smem:[#allocation22_spill]] %s2989_s15  ;;  %p115_p4 = por %p113_p2, %p3795_p0 }
  0x23   : > { %3845 = sst [smem:[#allocation23_spill]] %s2993_s16  ;;  %s103_s22 = ssub.s32 %s2993_s16, %s3926_s19 }
  0x24   : > { %3846 = sst [smem:[#allocation24_spill]] %s2997_s17  ;;  %p3793_p5 = scmp.lt.s32.totalorder %s3001_s18, 4 }
  0x25   : > { %3847 = sst [smem:[#allocation25_spill]] %s3001_s18  ;;  %p104_p6 = scmp.eq.s32.totalorder %s103_s22, 0 }
  0x26   : > { %s3848_s20 = scalar_select %p3145_p1, 1, 0 }
  0x27   : > { %3849 = sst [smem:[#allocation26_spill]] %s3926_s19  ;;  %s3794_s23 = sand.u32 1, %s3001_s18  }
  0x28   : > { %s3165_s24 = sand.u32 1, %s2969_s27   ;;  %p3173_p7 = pnand %p3793_p5, %p115_p4 }
  0x29   : > { %s3168_s13 = scalar_select %p104_p6, %s2969_s27, %s106_s21  }
  0x2a   : > { %s2449_s12 = smul.u32 384, %s3165_s24  ;;  %s3852_s2 = sld [smem:[#allocation36_spill]] }
  0x2b   : > { %3850 = sst [smem:[#allocation27_spill]] %s3168_s13  ;;  %s2450_s10 = smul.u32 6144, %s2993_s16 }
  0x2c   : > { %s3851_s11 = scalar_select %p3173_p7, 1, 0 }
  0x2d   : > { %s460_s22 = scalar_lea.vmem [#allocation5], %s2449_s12  ;;  %s3187_s13 = scalar_lea.sflag [#allocation6], %s3794_s23 }
  0x2e   : > { %s467_s21 = sshll.u32 %s460_s22, 4  ;;  %p3193_p9 = pneg %p3173_p7  ;;  %s3183_s21 = int_to_ptr.vmem [resolvable:$true] %s467_s21 }
  0x30   : > { %s3181_s19 = scalar_lea.hbm %s3852_s2, %s2450_s10  ;;  %s2726_s10 = scalar_lea.hbm %s3852_s2, 12288 }
  0x31   : > { %s2721_s27 = scalar_lea.hbm %s3181_s19, 6144  ;;  %p2727_p12 = scmp.lt.u32.totalorder %s3181_s19, %s3852_s2 }
  0x32   : > { %p2722_p8 = scmp.ne.s32.totalorder %s3181_s19, %s2721_s27  ;;  %p2728_p13 = scmp.lt.u32.totalorder %s2726_s10, %s2721_s27 }
  0x33   : > { %p2730_p4 = scmp.lt.u32.totalorder %s2721_s27, %s3181_s19 }
  0x34   : > { %p2724_p10 = pnand %p3193_p9, %p2722_p8  ;;  %p2729_p2 = por %p2728_p13, %p2727_p12 }
  0x36   : > { %p2725_p11 = pneg %p2724_p10  ;;  %p2731_p6 = por %p2730_p4, %p2729_p2 }
  0x38   : > { %p2732_p5 = pnand %p2731_p6, %p2725_p11 }
  0x3a   : > { %2735 = shalt.err (!%p2732_p5)
}
  0x3b   : > { %s2736_s23 = scalar_lea.vmem %s3183_s21, 6144  ;;  %s3003_s6 = smov [#allocation5]  }
  0x3c   : > { %p2737_p8 = scmp.ne.s32.totalorder %s3183_s21, %s2736_s23  ;;  %s2741_s8 = sshll.u32 %s3003_s6, 4  ;;  %s2742_s8 = int_to_ptr.vmem [resolvable:$false] %s2741_s8 }
  0x3d   : > { %s2743_s12 = scalar_lea.vmem %s2742_s8, 12288  ;;  %p2744_p0 = scmp.lt.s32.totalorder %s3183_s21, %s2742_s8 }
  0x3e   : > { %p2739_p10 = pnand %p2737_p8, %p3193_p9  ;;  %p2745_p1 = scmp.lt.s32.totalorder %s2743_s12, %s2736_s23 }
  0x40   : > { %p2740_p3 = pneg %p2739_p10  ;;  %p2746_p12 = por %p2745_p1, %p2744_p0 }
  0x42   : > { %p2747_p13 = pnand %p2746_p12, %p2740_p3 }
  0x44   : > { %2750 = shalt.err (!%p2747_p13)
}
  0x45   : > { %s3004_s27 = smov 384   ;;  %s3005_s10 = smov 24  }
  0x46   : > { %2470 = dma.hbm_to_vmem [thread:$0]  (!%p3173_p7), %s3181_s19, 6144, %s3183_s21, %s3187_s13, %s3004_s27, %s3004_s27, %s3005_s10  }
  0x47   : > { %p2220_p5 = scmp.ge.s32.totalorder %s3001_s18, 1  ;;  %p580_p11 = scmp.lt.s32.totalorder %s3001_s18, 5 }
  0x48   : > { %s3799_s22 = sshll.u32 %s3165_s24, 6  ;;  %s2327_s6 = sshll.u32 %s2993_s16, 10 }
  0x49   : > { %p3219_p0 = pnand %p2220_p5, %p580_p11  ;;  %s3856_s7 = sld [smem:[#allocation41_spill]] }
  0x4a   : > { %s520_s4 = scalar_lea.vmem [#allocation8], %s3799_s22  ;;  %s3857_s9 = sld [smem:[#allocation43_spill]] }
  0x4b   : > { %s3854_s23 = scalar_select %p3219_p0, 1, 0 }
  0x4c   : > { %s527_s19 = sshll.u32 %s520_s4, 4  ;;  %s3858_s1 = sand.u32 1, %s3001_s18   ;;  %s3232_s19 = int_to_ptr.vmem [resolvable:$true] %s527_s19 }
  0x4d   : > { %3855 = sst [smem:[#allocation28_spill]] %s3854_s23  ;;  %s3241_s14 = scalar_lea.sflag [#allocation9], %s3858_s1 }
  0x4f   : > { %s3228_s2 = scalar_lea.hbm %s3856_s7, %s2327_s6  ;;  %s2756_s22 = scalar_lea.hbm %s3856_s7, 2048 }
  0x50   : > { %s3237_s10 = scalar_lea.hbm %s3857_s9, %s2327_s6  ;;  %s2751_s8 = scalar_lea.hbm %s3228_s2, 1024 }
  0x51   : > { %p2752_p1 = scmp.ne.s32.totalorder %s3228_s2, %s2751_s8  ;;  %p2757_p4 = scmp.lt.u32.totalorder %s3228_s2, %s3856_s7 }
  0x52   : > { %p2758_p6 = scmp.lt.u32.totalorder %s2756_s22, %s2751_s8  ;;  %p2760_p10 = scmp.lt.u32.totalorder %s2751_s8, %s3228_s2 }
  0x53   : > { %p2754_p3 = pnand %p2752_p1, %p3193_p9 }
  0x54   : > { %p2759_p8 = por %p2758_p6, %p2757_p4 }
  0x55   : > { %p2755_p2 = pneg %p2754_p3 }
  0x56   : > { %p2761_p12 = por %p2760_p10, %p2759_p8 }
  0x58   : > { %p2762_p13 = pnand %p2761_p12, %p2755_p2 }
  0x5a   : > { %2765 = shalt.err (!%p2762_p13)
}
  0x5b   : > { %s2766_s1 = scalar_lea.vmem %s3232_s19, 1024  ;;  %s3006_s15 = smov [#allocation8]  }
  0x5c   : > { %p2767_p5 = scmp.ne.s32.totalorder %s3232_s19, %s2766_s1  ;;  %s2771_s6 = sshll.u32 %s3006_s15, 4  ;;  %s2772_s6 = int_to_ptr.vmem [resolvable:$false] %s2771_s6 }
  0x5d   : > { %s2773_s23 = scalar_lea.vmem %s2772_s6, 2048  ;;  %p2774_p3 = scmp.lt.s32.totalorder %s3232_s19, %s2772_s6 }
  0x5e   : > { %p2769_p11 = pnand %p2767_p5, %p3193_p9  ;;  %p2775_p0 = scmp.lt.s32.totalorder %s2773_s23, %s2766_s1 }
  0x60   : > { %p2770_p1 = pneg %p2769_p11  ;;  %p2776_p4 = por %p2775_p0, %p2774_p3 }
  0x62   : > { %p2777_p6 = pnand %p2776_p4, %p2770_p1 }
  0x64   : > { %2780 = shalt.err (!%p2777_p6)
}
  0x65   : > { %s3801_s22 = smov 64   ;;  %s3803_s21 = smov 4  }
  0x66   : > { %2476 = dma.hbm_to_vmem [thread:$0]  (!%p3173_p7), %s3228_s2, 1024, %s3232_s19, %s3241_s14, %s3801_s22, %s3801_s22, %s3803_s21  }
  0x67   : > { %s3859_s27 = sshll.u32 %s3165_s24, 6  ;;  %s3273_s4 = sadd.s32 4294967295, %s3001_s18  }
  0x68   : > { %s547_s8 = scalar_lea.vmem [#allocation10], %s3859_s27  ;;  %3860 = sst [smem:[#allocation29_spill]] %s3273_s4 }
  0x69   : > { %s554_s12 = sshll.u32 %s547_s8, 4  ;;  %s2204_s1 = sadd.s32 4294967294, %s3001_s18   ;;  %s3270_s12 = int_to_ptr.vmem [resolvable:$true] %s554_s12 }
  0x6a   : > { %s47_s15 = sadd.s32 1, %s2997_s17  ;;  %s54_s6 = sadd.s32 1, %s2981_s30 }
  0x6b   : > { %p3861_p0 = scmp.ne.s32.totalorder %s3848_s20, 0  ;;  %p61_p2 = scmp.ne.s32.totalorder %s2981_s30, %s2977_s29 }
  0x6c   : > { %p67_p8 = scmp.ne.s32.totalorder %s2977_s29, %s2973_s28  ;;  %p68_p12 = scmp.eq.s32.totalorder %s3273_s4, 0 }
  0x6d   : > { %s3928_s15 = smov (!%p3861_p0, %s47_s15), %s2997_s17  ;;  %p3862_p13 = scmp.eq.s32.totalorder %s3001_s18, 0 }
  0x6e   : > { %p49_p10 = scmp.ge.s32.totalorder %s3928_s15, 2  ;;  %p403_p11 = scmp.eq.s32.totalorder %s3273_s4, 3 }
  0x6f   : > { %p3288_p5 = por %p3862_p13, %p61_p2  ;;  %p3298_p1 = por %p68_p12, %p67_p8 }
  0x70   : > { %s3930_s15 = smov (%p49_p10, %s3928_s15), 0  ;;  %p3866_p3 = scmp.ne.s32.totalorder %s2965_s26, %s2961_s25 }
  0x71   : > { %3864 = sst [smem:[#allocation30_spill]] %s3930_s15  ;;  %s51_s23 = ssub.s32 %s2997_s17, %s3930_s15 }
  0x72   : > { %s3865_s20 = scalar_select %p3298_p1, 1, 0 }
  0x73   : > { %p3305_p4 = por %p3866_p3, %p68_p12  ;;  %p3311_p6 = por %p403_p11, %p61_p2 }
  0x74   : > { %p52_p0 = scmp.eq.s32.totalorder %s51_s23, 0  ;;  %p409_p10 = scmp.eq.s32.totalorder %s2204_s1, 3 }
  0x75   : > { %s3867_s19 = scalar_select %p3305_p4, 1, 0 }
  0x76   : > { %s3868_s27 = scalar_select %p3311_p6, 1, 0 }
  0x77   : > { %s429_s8 = sand.u32 1, %s2981_s30   ;;  %s2325_s22 = sshll.u32 %s2997_s17, 7 }
  0x78   : > { %3869 = sst [smem:[#allocation31_spill]] %s3868_s27  ;;  %p3323_p13 = por %p409_p10, %p67_p8 }
  0x79   : > { %s3318_s21 = scalar_select %p52_p0, %s2981_s30, %s54_s6  }
  0x7a   : > { %s3871_s7 = scalar_select %p3323_p13, 1, 0 }
  0x7b   : > { %3870 = sst [smem:[#allocation32_spill]] %s3318_s21  ;;  %s2207_s25 = sshll.u32 %s429_s8, 3 }
  0x7c   : > { %3872 = sst [smem:[#allocation33_spill]] %s3871_s7  ;;  %s3873_s0 = sld [smem:[#allocation34_spill]] }
  0x7d   : > { %p3874_p2 = scmp.lt.s32.totalorder %s3001_s18, 4  ;;  %s433_s6 = scalar_lea.vmem [#allocation2], %s2207_s25 }
  0x7e   : > { %s440_s23 = sshll.u32 %s433_s6, 4  ;;  %s2211_s17 = sshll.u32 %s3165_s24, 7  ;;  %s3341_s23 = int_to_ptr.vmem [resolvable:$true] %s440_s23 }
  0x7f   : > { %p3336_p12 = pnand %p3874_p2, %p3288_p5  ;;  %s3343_s26 = scalar_lea.sflag [#allocation3], %s429_s8 }
  0x81   : > { %p2783_p11 = pneg %p3336_p12 }
  0x82   : > { %s3330_s15 = scalar_lea.hbm %s3873_s0, %s2325_s22  ;;  %s2786_s21 = scalar_lea.hbm %s3873_s0, 256 }
  0x83   : > { %s2781_s22 = scalar_lea.hbm %s3330_s15, 128  ;;  %p2787_p0 = scmp.lt.u32.totalorder %s3330_s15, %s3873_s0 }
  0x84   : > { %p2782_p8 = scmp.ne.s32.totalorder %s3330_s15, %s2781_s22  ;;  %p2788_p10 = scmp.lt.u32.totalorder %s2786_s21, %s2781_s22 }
  0x85   : > { %p2790_p13 = scmp.lt.u32.totalorder %s2781_s22, %s3330_s15 }
  0x86   : > { %p2784_p3 = pnand %p2783_p11, %p2782_p8  ;;  %p2789_p2 = por %p2788_p10, %p2787_p0 }
  0x88   : > { %p2785_p5 = pneg %p2784_p3  ;;  %p2791_p6 = por %p2790_p13, %p2789_p2 }
  0x8a   : > { %p2792_p4 = pnand %p2791_p6, %p2785_p5 }
  0x8c   : > { %2795 = shalt.err (!%p2792_p4)
}
  0x8d   : > { %s2796_s8 = scalar_lea.vmem %s3341_s23, 128  ;;  %s3009_s6 = smov [#allocation2]  }
  0x8e   : > { %p2797_p8 = scmp.ne.s32.totalorder %s3341_s23, %s2796_s8  ;;  %s2801_s4 = sshll.u32 %s3009_s6, 4  ;;  %s2802_s4 = int_to_ptr.vmem [resolvable:$false] %s2801_s4 }
  0x8f   : > { %s2803_s30 = scalar_lea.vmem %s2802_s4, 256  ;;  %p2804_p7 = scmp.lt.s32.totalorder %s3341_s23, %s2802_s4 }
  0x90   : > { %p2799_p3 = pnand %p2797_p8, %p2783_p11  ;;  %p2805_p0 = scmp.lt.s32.totalorder %s2803_s30, %s2796_s8 }
  0x92   : > { %p2800_p1 = pneg %p2799_p3  ;;  %p2806_p10 = por %p2805_p0, %p2804_p7 }
  0x94   : > { %p2807_p13 = pnand %p2806_p10, %p2800_p1 }
  0x96   : > { %2810 = shalt.err (!%p2807_p13)
}
  0x97   : > { %s3876_s21 = smov 4   ;;  %s3877_s22 = smov 64  }
  0x98   : > { %2467 = dma.hbm_to_vmem [thread:$0]  (!%p3336_p12), %s3330_s15, 128, %s3341_s23, %s3343_s26, %s3877_s22, %s3877_s22, %s3876_s21  }
  0x99   : > { %s2326_s2 = sshll.u32 %s2993_s16, 11  ;;  %s3878_s3 = sld [smem:[#allocation37_spill]] }
  0x9a   : > { %s481_s1 = scalar_lea.vmem [#allocation7], %s2211_s17 }
  0x9b   : > { %s488_s4 = sshll.u32 %s481_s1, 4  ;;  %s3382_s4 = int_to_ptr.vmem [resolvable:$true] %s488_s4 }
  0x9f   : > { %s3378_s8 = scalar_lea.hbm %s3878_s3, %s2326_s2  ;;  %s2816_s26 = scalar_lea.hbm %s3878_s3, 4096 }
  0xa0   : > { %s2811_s30 = scalar_lea.hbm %s3378_s8, 2048  ;;  %p2817_p6 = scmp.lt.u32.totalorder %s3378_s8, %s3878_s3 }
  0xa1   : > { %p2812_p7 = scmp.ne.s32.totalorder %s3378_s8, %s2811_s30  ;;  %p2818_p12 = scmp.lt.u32.totalorder %s2816_s26, %s2811_s30 }
  0xa2   : > { %p2820_p5 = scmp.lt.u32.totalorder %s2811_s30, %s3378_s8 }
  0xa3   : > { %p2814_p1 = pnand %p2812_p7, %p3193_p9  ;;  %p2819_p11 = por %p2818_p12, %p2817_p6 }
  0xa5   : > { %p2815_p4 = pneg %p2814_p1  ;;  %p2821_p2 = por %p2820_p5, %p2819_p11 }
  0xa7   : > { %p2822_p8 = pnand %p2821_p2, %p2815_p4 }
  0xa9   : > { %2825 = shalt.err (!%p2822_p8)
}
  0xaa   : > { %s2826_s17 = scalar_lea.vmem %s3382_s4, 2048  ;;  %s3010_s24 = smov [#allocation7]  }
  0xab   : > { %p2827_p3 = scmp.ne.s32.totalorder %s3382_s4, %s2826_s17  ;;  %s2831_s6 = sshll.u32 %s3010_s24, 4  ;;  %s2832_s6 = int_to_ptr.vmem [resolvable:$false] %s2831_s6 }
  0xac   : > { %s2833_s1 = scalar_lea.vmem %s2832_s6, 4096  ;;  %p2834_p13 = scmp.lt.s32.totalorder %s3382_s4, %s2832_s6 }
  0xad   : > { %p2829_p0 = pnand %p2827_p3, %p3193_p9  ;;  %p2835_p7 = scmp.lt.s32.totalorder %s2833_s1, %s2826_s17 }
  0xaf   : > { %p2830_p10 = pneg %p2829_p0  ;;  %p2836_p1 = por %p2835_p7, %p2834_p13 }
  0xb1   : > { %p2837_p6 = pnand %p2836_p1, %p2830_p10 }
  0xb3   : > { %2840 = shalt.err (!%p2837_p6)
}
  0xb4   : > { %p3879_p4 = scmp.ne.s32.totalorder %s3851_s11, 0  ;;  %s2841_s30 = scalar_lea.hbm %s3237_s10, 1024 }
  0xb5   : > { %p2842_p12 = scmp.ne.s32.totalorder %s3237_s10, %s2841_s30  ;;  %s2846_s26 = scalar_lea.hbm %s3857_s9, 2048 }
  0xb6   : > { %2473 = dma.hbm_to_vmem [thread:$0]  (!%p3879_p4), %s3378_s8, 2048, %s3382_s4, %s3187_s13, %s3877_s22, %s3877_s22, %s3876_s21  }
  0xb7   : > { %p2844_p11 = pnand %p2842_p12, %p3193_p9  ;;  %p2847_p2 = scmp.lt.u32.totalorder %s3237_s10, %s3857_s9 }
  0xb8   : > { %p2848_p8 = scmp.lt.u32.totalorder %s2846_s26, %s2841_s30  ;;  %p2850_p0 = scmp.lt.u32.totalorder %s2841_s30, %s3237_s10 }
  0xb9   : > { %p2845_p5 = pneg %p2844_p11 }
  0xba   : > { %p2849_p3 = por %p2848_p8, %p2847_p2 }
  0xbc   : > { %p2851_p10 = por %p2850_p0, %p2849_p3 }
  0xbe   : > { %p2852_p13 = pnand %p2851_p10, %p2845_p5 }
  0xc0   : > { %2855 = shalt.err (!%p2852_p13)
}
  0xc1   : > { %s2856_s13 = scalar_lea.vmem %s3270_s12, 1024  ;;  %s3011_s8 = smov [#allocation10]  }
  0xc2   : > { %p2857_p7 = scmp.ne.s32.totalorder %s3270_s12, %s2856_s13  ;;  %s2861_s4 = sshll.u32 %s3011_s8, 4  ;;  %s2862_s4 = int_to_ptr.vmem [resolvable:$false] %s2861_s4 }
  0xc3   : > { %s2863_s17 = scalar_lea.vmem %s2862_s4, 2048  ;;  %p2864_p12 = scmp.lt.s32.totalorder %s3270_s12, %s2862_s4 }
  0xc4   : > { %p2859_p1 = pnand %p2857_p7, %p3193_p9  ;;  %p2865_p11 = scmp.lt.s32.totalorder %s2863_s17, %s2856_s13 }
  0xc6   : > { %p2860_p6 = pneg %p2859_p1  ;;  %p2866_p2 = por %p2865_p11, %p2864_p12 }
  0xc8   : > { %p2867_p8 = pnand %p2866_p2, %p2860_p6 }
  0xca   : > { %2870 = shalt.err (!%p2867_p8)
}
  0xcb   : > { %2479 = dma.hbm_to_vmem [thread:$0]  (!%p3879_p4), %s3237_s10, 1024, %s3270_s12, %s3241_s14, %s3877_s22, %s3877_s22, %s3876_s21  }
  0xcc   : > { %s3880_s5 = sld [smem:[#allocation28_spill]] }
  0xd2   : > { %p3881_p9 = scmp.ne.s32.totalorder %s3880_s5, 0 }
  0xd3   : > { %s3437_s24 = sand.u32 (!%p3881_p9), 1, %s2977_s29   ;;  %p3882_p5 = scmp.ne.s32.totalorder (!%p3881_p9), %s3865_s20, 0 }
  0xd4   : > { %584 = sbr.rel (%p3881_p9) target bundleno = 2546 (0x9f2), region = 72  ;;  %s3815_s6 = sshll.u32 (!%p3881_p9), %s3437_s24, 3 }
  0xd5   : > { %s587_s1 = scalar_lea.sflag (!%p3881_p9), [#allocation3], %s3437_s24  ;;  %s3443_s11 = scalar_lea.vmem (!%p3881_p9), [#allocation2], %s3815_s6 }
  0xdb   : > { %2944 = dma.done.wait (%p3882_p5), %s587_s1, 128  }
  0xdc   : > { %2946 = vsyncadd (%p3882_p5), %s587_s1, 4294967168  ;;  %s3883_s14 = sld [smem:[#allocation29_spill]]  ;;  %s3884_s10 = sld [smem:[#allocation16_spill]] }
  0xdd   : > { %p3885_p4 = scmp.ne.s32.totalorder %s3867_s19, 0 }
  0xe2   : > { %s595_s12 = sand.u32 1, %s3883_s14   ;;  %s597_s21 = sand.u32 1, %s3884_s10  }
  0xe3   : > { %s2451_s22 = smul.u32 384, %s597_s21  ;;  %s596_s30 = scalar_lea.sflag [#allocation6], %s595_s12 }
  0xe5   : > { %s3451_s15 = scalar_lea.vmem [#allocation5], %s2451_s22 }
  0xe6   : > { %2948 = dma.done.wait (%p3885_p4), %s596_s30, 8192  }
  0xe7   : > { %2950 = vsyncadd (%p3885_p4), %s596_s30, 4294959104  ;;  %s2222_s23 = sshll.u32 %s597_s21, 7  ;;  %s2223_s26 = sshll.u32 %s597_s21, 6 }
  0xe8   : > { %s3457_s2 = scalar_lea.vmem [#allocation7], %s2222_s23  ;;  %s614_s20 = scalar_lea.sflag [#allocation9], %s595_s12 }
  0xe9   : > { %s3459_s25 = scalar_lea.vmem [#allocation8], %s2223_s26 }
  0xea   : > { %2952 = dma.done.wait (%p3885_p4), %s614_s20, 2048  }
  0xeb   : > { %2954 = vsyncadd (%p3885_p4), %s614_s20, 4294965248  ;;  %s3886_s13 = sld [smem:[#allocation22_spill]]  ;;  %s3887_s8 = sld [smem:[#allocation21_spill]] }
  0xec   : > { %s3890_s23 = sld [smem:[#allocation39_spill]]  ;;  %s3891_s3 = sld [smem:[#allocation40_spill]] }
  0xed   : > { %s3892_s16 = sld [smem:[#allocation42_spill]]  ;;  %s3893_s18 = sld [smem:[#allocation44_spill]] }
  0xee   : > { %s3894_s14 = sld [smem:[#allocation45_spill]]  ;;  %s3895_s22 = sld [smem:[#allocation46_spill]] }
  0xef   : > { %s3896_s0 = sshll.u32 %s3437_s24, 3 }
  0xf1   : > { %p713_p3 = scmp.lt.s32.totalorder %s3886_s13, 1  ;;  %p716_p0 = scmp.lt.s32.totalorder %s3887_s8, 1 }
  0xf2   : > { %p2226_p10 = scmp.ne.s32.totalorder %s3887_s8, 0 }
  0xf3   : > { %s3932_s13 = smov (!%p713_p3, %s3886_s13), 1  ;;  %v742_v0 = vld [vmem:[%s3443_s11] sm:$0xff] (!%p2226_p10)  }
  0xf4   : > { %s3471_s4 = scalar_select %p716_p0, %s3887_s8, 1 }
  0xf5   : > { %741 = sbr.rel (%p2226_p10) target bundleno = 252 (0xfc), region = 96 }
  0xf6   : > { %s721_s20 = scalar_lea.vmem %s3890_s23, %s3471_s4  ;;  %s724_s17 = scalar_lea.vmem %s3891_s3, %s3471_s4 }
  0xf7   : > { %s727_s29 = scalar_lea.vmem %s3892_s16, %s3471_s4  ;;  %s730_s1 = scalar_lea.vmem %s3893_s18, %s3471_s4 }
  0xf8   : > { %s733_s10 = scalar_lea.vmem %s3894_s14, %s3471_s4  ;;  %s736_s30 = scalar_lea.vmem %s3895_s22, %s3471_s4 }
  0xf9   : > { %s3505_s23 = scalar_lea.vmem [#allocation10], %s2223_s26  ;;  %s3509_s3 = scalar_lea.vmem [#allocation11], %s3896_s0 }
  0xfa   : > { %744 = vst [vmem:[%s3509_s3] sm:$0xff] (!%p2226_p10), %v742_v0  }
  0xfc PF: > { %v2583_v1 = vld [vmem:[%s3451_s15 + $0xc] ss:$24 sps:$4 sm:$0xff]   ;;  %v2585_v2 = vld [vmem:[%s3451_s15 + $0x8] ss:$24 sps:$4 sm:$0xff]   ;;  %v3012_v3 = vmov 0   ;;  %v3013_v35 = vmov 0.0  }
  0xfd   : > { %1120 = vmatprep.mubr.bf16.mxu1 %v3012_v3  ;;  %1077 = vmatprep.mubr.bf16.mxu0 %v3012_v3  ;;  %v2586_v4 = vld [vmem:[%s3451_s15 + $0x3c] ss:$24 sps:$4 sm:$0xff]   ;;  %v2590_v6 = vld [vmem:[%s3451_s15 + $0x38] ss:$24 sps:$4 sm:$0xff]   ;;  %v2592_v8 = vld [vmem:[%s3451_s15 + $0x6c] ss:$24 sps:$4 sm:$0xff]  }
  0xfe   : > { %1088 = vmatprep.subr.bf16.mxu1 %v2583_v1  ;;  %v2588_v5 = vld [vmem:[%s3451_s15 + $0x4] ss:$24 sps:$4 sm:$0xff]   ;;  %v2591_v7 = vld [vmem:[%s3451_s15] ss:$24 sps:$4 sm:$0xff]   ;;  %v2594_v9 = vld [vmem:[%s3451_s15 + $0x34] ss:$24 sps:$4 sm:$0xff]  }
  0xff   : > { %1089 = vmatpush1.bf16.msra.mxu1 %v2585_v2  ;;  %1045 = vmatprep.subr.bf16.mxu0 %v2588_v5  ;;  %v2597_v10 = vld [vmem:[%s3451_s15 + $0x30] ss:$24 sps:$4 sm:$0xff]   ;;  %v2598_v12 = vld [vmem:[%s3451_s15 + $0x9c] ss:$24 sps:$4 sm:$0xff]   ;;  %v2603_v14 = vld [vmem:[%s3451_s15 + $0x60] ss:$24 sps:$4 sm:$0xff]  }
 0x100   : > { %1090 = vmatprep.subr.bf16.mxu1 %v2586_v4  ;;  %1046 = vmatpush1.bf16.msra.mxu0 %v2591_v7  ;;  %v2596_v11 = vld [vmem:[%s3451_s15 + $0x68] ss:$24 sps:$4 sm:$0xff]   ;;  %v2600_v13 = vld [vmem:[%s3451_s15 + $0x64] ss:$24 sps:$4 sm:$0xff]   ;;  %v2602_v15 = vld [vmem:[%s3451_s15 + $0x98] ss:$24 sps:$4 sm:$0xff]  }
 0x101   : > { %1047 = vmatprep.subr.bf16.mxu0 %v2594_v9  ;;  %v2606_v16 = vld [vmem:[%s3451_s15 + $0x94] ss:$24 sps:$4 sm:$0xff]   ;;  %v2608_v18 = vld [vmem:[%s3451_s15 + $0xc8] ss:$24 sps:$4 sm:$0xff]   ;;  %v2612_v20 = vld [vmem:[%s3451_s15 + $0xc4] ss:$24 sps:$4 sm:$0xff]  }
 0x102   : > { %v2604_v17 = vld [vmem:[%s3451_s15 + $0xcc] ss:$24 sps:$4 sm:$0xff]   ;;  %v2609_v19 = vld [vmem:[%s3451_s15 + $0x90] ss:$24 sps:$4 sm:$0xff]   ;;  %v2610_v21 = vld [vmem:[%s3451_s15 + $0xfc] ss:$24 sps:$4 sm:$0xff]  }
 0x103   : > { %1091 = vmatpush1.bf16.msra.mxu1 %v2590_v6  ;;  %v2615_v22 = vld [vmem:[%s3451_s15 + $0xc0] ss:$24 sps:$4 sm:$0xff]   ;;  %v2618_v24 = vld [vmem:[%s3451_s15 + $0xf4] ss:$24 sps:$4 sm:$0xff]   ;;  %v2621_v27 = vld [vmem:[%s3451_s15 + $0xf0] ss:$24 sps:$4 sm:$0xff]  }
 0x104   : > { %1092 = vmatprep.subr.bf16.mxu1 %v2592_v8  ;;  %1048 = vmatpush1.bf16.msra.mxu0 %v2597_v10  ;;  %v2614_v23 = vld [vmem:[%s3451_s15 + $0xf8] ss:$24 sps:$4 sm:$0xff]   ;;  %v2616_v25 = vld [vmem:[%s3451_s15 + $0x12c] ss:$24 sps:$4 sm:$0xff]   ;;  %v2620_v26 = vld [vmem:[%s3451_s15 + $0x128] ss:$24 sps:$4 sm:$0xff]  }
 0x105   : > { %1049 = vmatprep.subr.bf16.mxu0 %v2600_v13  ;;  %v2624_v28 = vld [vmem:[%s3451_s15 + $0x124] ss:$24 sps:$4 sm:$0xff]   ;;  %v2627_v30 = vld [vmem:[%s3451_s15 + $0x120] ss:$24 sps:$4 sm:$0xff]   ;;  %v2629_v33 = vld [vmem:[%s3451_s15 + $0x154] ss:$24 sps:$4 sm:$0xff]  }
 0x106   : > { %v2622_v29 = vld [vmem:[%s3451_s15 + $0x15c] ss:$24 sps:$4 sm:$0xff]   ;;  %v2626_v31 = vld [vmem:[%s3451_s15 + $0x158] ss:$24 sps:$4 sm:$0xff]   ;;  %v3547_v32 = vld [vmem:[%s3509_s3] sm:$0xff]   ;;  %vm3014_vm0 = vmmov 0  }
 0x107   : > { %1093 = vmatpush1.bf16.msra.mxu1 %v2596_v11  ;;  %v2631_v34 = vld [vmem:[%s3451_s15 + $0x150] ss:$24 sps:$4 sm:$0xff]   ;;  %v2634_v37 = vld [vmem:[%s3451_s15 + $0x14] ss:$24 sps:$4 sm:$0xff]   ;;  %v2637_v38 = vld [vmem:[%s3451_s15 + $0x44] ss:$24 sps:$4 sm:$0xff]  }
 0x108   : > { %1094 = vmatprep.subr.bf16.mxu1 %v2598_v12  ;;  %1050 = vmatpush1.bf16.msra.mxu0 %v2603_v14  ;;  %v2632_v36 = vld [vmem:[%s3451_s15 + $0x10] ss:$24 sps:$4 sm:$0xff]   ;;  %v2635_v39 = vld [vmem:[%s3451_s15 + $0x40] ss:$24 sps:$4 sm:$0xff]   ;;  %v2640_v40 = vld [vmem:[%s3451_s15 + $0x74] ss:$24 sps:$4 sm:$0xff]  }
 0x109   : > { %1051 = vmatprep.subr.bf16.mxu0 %v2606_v16  ;;  %v2638_v41 = vld [vmem:[%s3451_s15 + $0x70] ss:$24 sps:$4 sm:$0xff]   ;;  %v2643_v42 = vld [vmem:[%s3451_s15 + $0xa4] ss:$24 sps:$4 sm:$0xff]   ;;  %v2641_v43 = vld [vmem:[%s3451_s15 + $0xa0] ss:$24 sps:$4 sm:$0xff]  }
 0x10a   : > { %v2646_v44 = vld [vmem:[%s3451_s15 + $0xd4] ss:$24 sps:$4 sm:$0xff]   ;;  %v2644_v45 = vld [vmem:[%s3451_s15 + $0xd0] ss:$24 sps:$4 sm:$0xff]   ;;  %v2649_v46 = vld [vmem:[%s3451_s15 + $0x104] ss:$24 sps:$4 sm:$0xff]  }
 0x10b   : > { %1095 = vmatpush1.bf16.msra.mxu1 %v2602_v15  ;;  %v2647_v47 = vld [vmem:[%s3451_s15 + $0x100] ss:$24 sps:$4 sm:$0xff]   ;;  %v2652_v48 = vld [vmem:[%s3451_s15 + $0x134] ss:$24 sps:$4 sm:$0xff]   ;;  %v2650_v49 = vld [vmem:[%s3451_s15 + $0x130] ss:$24 sps:$4 sm:$0xff]  }
 0x10c   : > { %1096 = vmatprep.subr.bf16.mxu1 %v2604_v17  ;;  %1052 = vmatpush1.bf16.msra.mxu0 %v2609_v19  ;;  %v2655_v50 = vld [vmem:[%s3451_s15 + $0x164] ss:$24 sps:$4 sm:$0xff]   ;;  %v2653_v51 = vld [vmem:[%s3451_s15 + $0x160] ss:$24 sps:$4 sm:$0xff]   ;;  %s3897_s28 = sld [smem:[#allocation35_spill]]  ;;  %vm1227_vm1 = vcmask 130048  }
 0x10d   : > { %1053 = vmatprep.subr.bf16.mxu0 %v2612_v20  ;;  %s3899_s6 = sld [smem:[#allocation38_spill]] }
 0x10f   : > { %1097 = vmatpush1.bf16.msra.mxu1 %v2608_v18 }
 0x110   : > { %1098 = vmatprep.subr.bf16.mxu1 %v2610_v21  ;;  %1054 = vmatpush1.bf16.msra.mxu0 %v2615_v22 }
 0x111   : > { %1055 = vmatprep.subr.bf16.mxu0 %v2618_v24 }
 0x112   : > { %s3898_s16 = scalar_lea.vmem %s3897_s28, %s3932_s13 }
 0x113   : > { %1099 = vmatpush1.bf16.msra.mxu1 %v2614_v23  ;;  %v2276_v0 = vld [vmem:[%s3898_s16] ss:$0 sm:$0xff]  ;;  %s3900_s11 = scalar_lea.vmem %s3899_s6, %s3471_s4  ;;  %s1961_s16 = sshll.u32 %s3509_s3, 4  ;;  %s3712_s16 = int_to_ptr.vmem [resolvable:$true] %s1961_s16 }
 0x114   : > { %1100 = vmatprep.subr.bf16.mxu1 %v2616_v25  ;;  %1056 = vmatpush1.bf16.msra.mxu0 %v2621_v27  ;;  %s2871_s4 = scalar_lea.vmem %s3712_s16, 128 }
 0x115   : > { %1057 = vmatprep.subr.bf16.mxu0 %v2624_v28  ;;  %p2872_p13 = scmp.ne.s32.totalorder %s3712_s16, %s2871_s4 }
 0x117   : > { %1101 = vmatpush1.bf16.msra.mxu1 %v2620_v26 }
 0x118   : > { %1102 = vmatprep.subr.bf16.mxu1 %v2622_v29  ;;  %1058 = vmatpush1.bf16.msra.mxu0 %v2627_v30 }
 0x119   : > { %1059 = vmatprep.subr.bf16.mxu0 %v2629_v33 }
 0x11b   : > { %1103 = vmatpush1.bf16.msra.mxu1 %v2626_v31 }
 0x11c   : > { %1060 = vmatpush1.bf16.msra.mxu0 %v2631_v34  ;;  %2385 = vmatprep.subr.bf16.mxu1 %v3013_v35 }
 0x11d   : > { %1131 = vmatprep.subr.bf16.mxu0 %v2634_v37 }
 0x11e   : > { %1121 = vmatmul.mubr.bf16.vlgmr.msra.gmra.mrb[0].mxu1 %v3547_v32 }
 0x11f   : > { %1078 = vmatmul.mubr.bf16.vlgmr.msra.gmra.mrb[0].mxu0 %v3547_v32  ;;  %2387 = vmatprep.mubr.msk.bf16.mxu1 %vm3014_vm0, %v3013_v35 }
 0x120   : > { %1163 = vmatprep.mubr.bf16.mxu0 %v3012_v3  ;;  %1132 = vmatpush1.bf16.msra.mxu0 %v2632_v36 }
 0x121   : > { %1133 = vmatprep.subr.bf16.mxu0 %v2637_v38 }
 0x124   : > { %1134 = vmatpush1.bf16.msra.mxu0 %v2635_v39 }
 0x125   : > { %1135 = vmatprep.subr.bf16.mxu0 %v2640_v40 }
 0x128   : > { %1136 = vmatpush1.bf16.msra.mxu0 %v2638_v41 }
 0x129   : > { %1137 = vmatprep.subr.bf16.mxu0 %v2643_v42 }
 0x12c   : > { %1138 = vmatpush1.bf16.msra.mxu0 %v2641_v43 }
 0x12d   : > { %1139 = vmatprep.subr.bf16.mxu0 %v2646_v44 }
 0x130   : > { %1140 = vmatpush1.bf16.msra.mxu0 %v2644_v45 }
 0x131   : > { %1141 = vmatprep.subr.bf16.mxu0 %v2649_v46 }
 0x134   : > { %1142 = vmatpush1.bf16.msra.mxu0 %v2647_v47 }
 0x135   : > { %1143 = vmatprep.subr.bf16.mxu0 %v2652_v48 }
 0x138   : > { %1144 = vmatpush1.bf16.msra.mxu0 %v2650_v49 }
 0x139   : > { %1145 = vmatprep.subr.bf16.mxu0 %v2655_v50 }
 0x13c   : > { %1146 = vmatpush1.bf16.msra.mxu0 %v2653_v51  ;;  %v2656_v51 = vld [vmem:[%s3457_s2 + $0x40] sm:$0xff]  }
 0x13d   : > { %2345 = vmatprep.subr.bf16.mxu0 %v2656_v51 }
 0x13f   : > { %1164 = vmatmul.mubr.bf16.vlgmr.msra.gmra.mrb[4].mxu0 %v3547_v32 }
 0x1f1   : > { %v1122_v52 = vpop.f32.mrb[0].mxu1 }
 0x1f2   : > { %v1124_v53 = vpop.f32.mrb[1].mxu1  ;;  %v1079_v57 = vpop.f32.mrb[0].mxu0 }
 0x1f3   : > { %v1126_v54 = vpop.f32.mrb[2].mxu1  ;;  %v1081_v59 = vpop.f32.mrb[1].mxu0 }
 0x1f4   : > { %v1176_v55 = vpack.c.bf16 %v1126_v54, %v1122_v52  ;;  %v1128_v56 = vpop.f32.mrb[3].mxu1  ;;  %v1083_v60 = vpop.f32.mrb[2].mxu0  ;;  %v2657_v52 = vld [vmem:[%s3457_s2] sm:$0xff]   ;;  %v2659_v54 = vld [vmem:[%s3457_s2 + $0x8] sm:$0xff]  }
 0x1f5   : > { %v1177_v58 = vpack.c.bf16 %v1128_v56, %v1124_v53  ;;  %v1174_v61 = vpack.c.bf16 %v1083_v60, %v1079_v57  ;;  %v1085_v62 = vpop.f32.mrb[3].mxu0  ;;  %v2658_v53 = vld [vmem:[%s3457_s2 + $0x48] sm:$0xff]   ;;  %2346 = vmatpush3.bf16.msra.mxu0 %v2657_v52  ;;  %v2661_v56 = vld [vmem:[%s3457_s2 + $0x10] sm:$0xff]   ;;  %v2662_v57 = vld [vmem:[%s3457_s2 + $0x58] sm:$0xff]  }
 0x1f6   : > { %2386 = vmatpush3.bf16.xpose.msra.mxu1 %v1176_v55  ;;  %v1175_v63 = vpack.c.bf16 %v1085_v62, %v1081_v59  ;;  %2347 = vmatprep.subr.bf16.mxu0 %v2658_v53  ;;  %v2660_v55 = vld [vmem:[%s3457_s2 + $0x50] sm:$0xff]   ;;  %v2664_v59 = vld [vmem:[%s3457_s2 + $0x60] sm:$0xff]   ;;  %v2667_v62 = vld [vmem:[%s3457_s2 + $0x28] sm:$0xff]  }
 0x1f7   : > { %2391 = vmatprep.subr.bf16.mxu1 %v3013_v35  ;;  %v2665_v60 = vld [vmem:[%s3457_s2 + $0x20] sm:$0xff]  }
 0x1f9   : > { %2348 = vmatpush3.bf16.msra.mxu0 %v2659_v54 }
 0x1fa   : > { %2349 = vmatprep.subr.bf16.mxu0 %v2660_v55 }
 0x1fd   : > { %2388 = vmatmul.mubr.bf16.vlgmr.msra.gmra.mrb[4].mxu1 %v1174_v61  ;;  %2350 = vmatpush3.bf16.msra.mxu0 %v2661_v56  ;;  %v2666_v61 = vld [vmem:[%s3457_s2 + $0x68] sm:$0xff]  }
 0x1fe   : > { %2393 = vmatprep.mubr.msk.bf16.mxu1 %vm3014_vm0, %v3013_v35  ;;  %2351 = vmatprep.subr.bf16.mxu0 %v2662_v57 }
 0x212   : > { %v1165_v9 = vpop.f32.mrb[4].mxu0 }
 0x213   : > { %v1167_v10 = vpop.f32.mrb[5].mxu0 }
 0x214   : > { %v1169_v11 = vpop.f32.mrb[6].mxu0 }
 0x215   : > { %v1178_v12 = vpack.c.bf16 %v1169_v11, %v1165_v9  ;;  %v1171_v13 = vpop.f32.mrb[7].mxu0 }
 0x216   : > { %v1179_v14 = vpack.c.bf16 %v1171_v13, %v1167_v10 }
 0x217   : > { %2392 = vmatpush3.bf16.msra.mxu1 %v1178_v12 }
 0x218   : > { %2397 = vmatprep.subr.bf16.mxu1 %v3013_v35 }
 0x2d0   : > { %v1220_v1 = vpop.f32.mrb[4].mxu1 }
 0x2d1   : > { %v1221_v2 = vadd.f32 %v2276_v0, %v1220_v1  ;;  %v2389_v3 = vpop.f32.mrb[5].mxu1  ;;  %v2670_v1 = vld [vmem:[%s3457_s2 + $0x78] sm:$0xff]  }
 0x2d2   : > { %v1223_v4 = vpop.f32.mrb[6].mxu1 }
 0x2d3   : > { %v1224_v5 = vadd.f32 %v2276_v0, %v1223_v4  ;;  %v2390_v6 = vpop.f32.mrb[7].mxu1  ;;  %v1228_v7 = vsel %vm1227_vm1, %v1221_v2, -inf }
 0x2d4   : > { %1229 = vmax.xlane.f32.xlu0 %v1228_v7 }
 0x2d5   : > { %v1231_v8 = vsel %vm1227_vm1, %v1224_v5, -inf }
 0x2d8   : > { %1232 = vmax.xlane.f32.xlu0 %v1231_v8 }
 0x361   : > { %v1230_v15 = vpop.xlane.xlu0 %1229 }
 0x362   : > { %v1234_v16 = vsub.f32 %v1221_v2, %v1230_v15  ;;  %v2671_v2 = vld [vmem:[%s3457_s2 + $0x38] sm:$0xff]  }
 0x364   : > { %v1236_v17 = vmul.f32 1.442695, %v1234_v16 }
 0x365   : > { %v1233_v18 = vpop.xlane.xlu0 %1232 }
 0x366   : > { %v1235_v19 = vsub.f32 %v1224_v5, %v1233_v18  ;;  %2689 = vpow2.f32 %v1236_v17 }
 0x368   : > { %v1238_v20 = vmul.f32 1.442695, %v1235_v19 }
 0x36a   : > { %2691 = vpow2.f32 %v1238_v20 }
 0x370   : > { %v2690_v21 = vpop.eup %2689 }
 0x371   : > { %v1240_v47 = vsel %vm1227_vm1, %v2690_v21, 0.0 }
 0x374   : > { %v2692_v22 = vpop.eup %2691 }
 0x375   : > { %v1246_v23 = vpack.c.bf16 %v2692_v22, %v2690_v21  ;;  %v1243_v50 = vsel %vm1227_vm1, %v2692_v22, 0.0  ;;  %v2279_v22 = vld [vmem:[%s3900_s11] ss:$0 sm:$0xff]  ;;  %s1948_s11 = scalar_lea.sflag [#allocation4], %s3437_s24 }
 0x377   : > { %2394 = vmatmul.mubr.msk.bf16.vlgmr.msra.gmra.mrb[8].mxu1 %vm1227_vm1, %v1246_v23 }
 0x378   : > { %2398 = vmatpush3.bf16.xpose.msra.mxu1 %v1177_v58  ;;  %2399 = vmatprep.mubr.msk.bf16.mxu1 %vm3014_vm0, %v3013_v35  ;;  %v2663_v58 = vld [vmem:[%s3457_s2 + $0x18] sm:$0xff]  }
 0x379   : > { %2403 = vmatprep.subr.bf16.mxu1 %v3013_v35  ;;  %2352 = vmatpush3.bf16.msra.mxu0 %v2663_v58 }
 0x37a   : > { %2353 = vmatprep.subr.bf16.mxu0 %v2664_v59 }
 0x37d   : > { %2354 = vmatpush3.bf16.msra.mxu0 %v2665_v60 }
 0x37e   : > { %2355 = vmatprep.subr.bf16.mxu0 %v2666_v61 }
 0x37f   : > { %2400 = vmatmul.mubr.bf16.vlgmr.msra.gmra.mrb[12].mxu1 %v1175_v63  ;;  %v2668_v63 = vld [vmem:[%s3457_s2 + $0x70] sm:$0xff]  }
 0x380   : > { %2404 = vmatpush3.bf16.msra.mxu1 %v1179_v14  ;;  %2405 = vmatprep.mubr.msk.bf16.mxu1 %vm3014_vm0, %v3013_v35 }
 0x381   : > { %2409 = vmatprep.subr.bf16.mxu1 %v3013_v35  ;;  %2356 = vmatpush3.bf16.msra.mxu0 %v2667_v62 }
 0x382   : > { %2357 = vmatprep.subr.bf16.mxu0 %v2668_v63 }
 0x44a   : > { %v3592_v24 = vpop.f32.mrb[8].mxu1 }
 0x44b   : > { %v2395_v25 = vpop.f32.mrb[9].mxu1 }
 0x44c   : > { %v3594_v26 = vpop.f32.mrb[10].mxu1 }
 0x44d   : > { %v2396_v27 = vpop.f32.mrb[11].mxu1 }
 0x452   : > { %v1330_v28 = vpop.f32.mrb[12].mxu1 }
 0x453   : > { %v1331_v29 = vadd.f32 %v2276_v0, %v1330_v28  ;;  %v2401_v30 = vpop.f32.mrb[13].mxu1 }
 0x454   : > { %v1333_v31 = vpop.f32.mrb[14].mxu1  ;;  %v749_v30 = vunpack.c.h.bf16 %v3547_v32 }
 0x455   : > { %v1334_v33 = vadd.f32 %v2276_v0, %v1333_v31  ;;  %v2402_v34 = vpop.f32.mrb[15].mxu1  ;;  %v1337_v36 = vsel %vm1227_vm1, %v1331_v29, -inf  ;;  %v2669_v0 = vld [vmem:[%s3457_s2 + $0x30] sm:$0xff]  }
 0x456   : > { %1338 = vmax.xlane.f32.xlu1 %v1337_v36  ;;  %2358 = vmatpush3.bf16.msra.mxu0 %v2669_v0 }
 0x457   : > { %v1340_v37 = vsel %vm1227_vm1, %v1334_v33, -inf  ;;  %2359 = vmatprep.subr.bf16.mxu0 %v2670_v1 }
 0x45a   : > { %1341 = vmax.xlane.f32.xlu1 %v1340_v37  ;;  %2360 = vmatpush3.bf16.msra.mxu0 %v2671_v2 }
 0x45b   : > { %2429 = vmatprep.subr.bf16.mxu0 %v3013_v35 }
 0x4e3   : > { %v1339_v38 = vpop.xlane.xlu1 %1338 }
 0x4e4   : > { %v1343_v39 = vsub.f32 %v1331_v29, %v1339_v38  ;;  %v2673_v38 = vld [vmem:[%s3459_s25 + $0x8] sm:$0xff]  }
 0x4e6   : > { %v1345_v40 = vmul.f32 1.442695, %v1343_v39  ;;  %v2674_v39 = vld [vmem:[%s3459_s25 + $0x10] sm:$0xff]  }
 0x4e7   : > { %v1342_v41 = vpop.xlane.xlu1 %1341 }
 0x4e8   : > { %2693 = vpow2.f32 %v1345_v40  ;;  %v1344_v42 = vsub.f32 %v1334_v33, %v1342_v41  ;;  %v2675_v40 = vld [vmem:[%s3459_s25 + $0x18] sm:$0xff]   ;;  %v2676_v41 = vld [vmem:[%s3459_s25 + $0x20] sm:$0xff]  }
 0x4ea   : > { %v1347_v43 = vmul.f32 1.442695, %v1344_v42  ;;  %v2677_v42 = vld [vmem:[%s3459_s25 + $0x28] sm:$0xff]  }
 0x4ec   : > { %2695 = vpow2.f32 %v1347_v43  ;;  %v2678_v43 = vld [vmem:[%s3459_s25 + $0x30] sm:$0xff]  }
 0x4f2   : > { %v2694_v44 = vpop.eup %2693 }
 0x4f3   : > { %v1349_v45 = vsel %vm1227_vm1, %v2694_v44, 0.0 }
 0x4f4   : > { %1350 = vadd.xlane.f32.xlu0 %v1349_v45  ;;  %v2680_v45 = vld [vmem:[%s3505_s23] sm:$0xff]  }
 0x4f6   : > { %v2696_v46 = vpop.eup %2695 }
 0x4f7   : > { %v1352_v48 = vsel %vm1227_vm1, %v2696_v46, 0.0  ;;  %v1355_v49 = vpack.c.bf16 %v2696_v46, %v2694_v44  ;;  %v2679_v44 = vld [vmem:[%s3459_s25 + $0x38] sm:$0xff]   ;;  %v2681_v46 = vld [vmem:[%s3505_s23 + $0x8] sm:$0xff]  }
 0x4f8   : > { %1241 = vadd.xlane.f32.xlu0 %v1240_v47  ;;  %1353 = vadd.xlane.f32.xlu1 %v1352_v48  ;;  %v2682_v47 = vld [vmem:[%s3505_s23 + $0x10] sm:$0xff]   ;;  %v2683_v48 = vld [vmem:[%s3505_s23 + $0x18] sm:$0xff]  }
 0x4f9   : > { %2406 = vmatmul.mubr.msk.bf16.vlgmr.msra.gmra.mrb[16].mxu1 %vm1227_vm1, %v1355_v49  ;;  %v2684_v49 = vld [vmem:[%s3505_s23 + $0x20] sm:$0xff]  }
 0x4fa   : > { %2425 = vmatprep.mubr.msk.bf16.mxu1 %vm3014_vm0, %v3013_v35 }
 0x4fc   : > { %1244 = vadd.xlane.f32.xlu1 %v1243_v50  ;;  %v2685_v50 = vld [vmem:[%s3505_s23 + $0x28] sm:$0xff]  }
 0x581   : > { %v1351_v3 = vpop.xlane.xlu0 %1350 }
 0x585   : > { %v1242_v4 = vpop.xlane.xlu0 %1241  ;;  %v1354_v5 = vpop.xlane.xlu1 %1353 }
 0x586   : > { %2697 = vrcp.f32 %v1242_v4 }
 0x589   : > { %v1245_v6 = vpop.xlane.xlu1 %1244 }
 0x58a   : > { %2699 = vrcp.f32 %v1245_v6 }
 0x58b   : > { %2701 = vrcp.f32 %v1351_v3 }
 0x58c   : > { %2703 = vrcp.f32 %v1354_v5 }
 0x590   : > { %v2698_v7 = vpop.eup %2697 }
 0x591   : > { %v1293_v9 = vmul.f32 %v2698_v7, %v3592_v24 }
 0x594   : > { %v2700_v8 = vpop.eup %2699 }
 0x595   : > { %v1294_v10 = vmul.f32 %v2700_v8, %v3594_v26  ;;  %v2702_v13 = vpop.eup %2701  ;;  %v748_v26 = vunpack.c.l.bf16 %v3547_v32  ;;  %v2672_v32 = vld [vmem:[%s3459_s25] sm:$0xff]  }
 0x596   : > { %v2704_v15 = vpop.eup %2703  ;;  %2410 = vmatpush3.bf16.msra.mxu1 %v2672_v32 }
 0x597   : > { %v1295_v11 = vpack.c.bf16 %v1294_v10, %v1293_v9  ;;  %2411 = vmatprep.subr.bf16.mxu1 %v3013_v35 }
 0x59a   : > { %2412 = vmatpush3.bf16.msra.mxu1 %v2673_v38 }
 0x59b   : > { %2413 = vmatprep.subr.bf16.mxu1 %v3013_v35 }
 0x59e   : > { %2414 = vmatpush3.bf16.msra.mxu1 %v2674_v39 }
 0x59f   : > { %2415 = vmatprep.subr.bf16.mxu1 %v3013_v35 }
 0x5a2   : > { %2416 = vmatpush3.bf16.msra.mxu1 %v2675_v40 }
 0x5a3   : > { %2417 = vmatprep.subr.bf16.mxu1 %v3013_v35 }
 0x5a6   : > { %2418 = vmatpush3.bf16.msra.mxu1 %v2676_v41 }
 0x5a7   : > { %2419 = vmatprep.subr.bf16.mxu1 %v3013_v35 }
 0x5aa   : > { %2420 = vmatpush3.bf16.msra.mxu1 %v2677_v42 }
 0x5ab   : > { %2421 = vmatprep.subr.bf16.mxu1 %v3013_v35 }
 0x5ae   : > { %2422 = vmatpush3.bf16.msra.mxu1 %v2678_v43 }
 0x5af   : > { %2423 = vmatprep.subr.bf16.mxu1 %v3013_v35 }
 0x5b2   : > { %2424 = vmatpush3.bf16.msra.mxu1 %v2679_v44 }
 0x5cc   : > { %v1393_v12 = vpop.f32.mrb[16].mxu1 }
 0x5cd   : > { %v2407_v14 = vpop.f32.mrb[17].mxu1  ;;  %v1402_v17 = vmul.f32 %v2702_v13, %v1393_v12 }
 0x5ce   : > { %v1396_v16 = vpop.f32.mrb[18].mxu1 }
 0x5cf   : > { %v1403_v18 = vmul.f32 %v2704_v15, %v1396_v16  ;;  %v2408_v19 = vpop.f32.mrb[19].mxu1 }
 0x5d1   : > { %v1404_v20 = vpack.c.bf16 %v1403_v18, %v1402_v17  ;;  %v2296_v17 = vld [vmem:[%s721_s20] ss:$0 sm:$0xff] }
 0x5d3   : > { %1572 = vmatprep.mubr.bf16.mxu0 %v1404_v20 }
 0x5d4   : > { %1573 = vmatmul.mubr.bf16.vlgmr.msra.gmra.mrb[8].mxu0 %v1295_v11 }
 0x5d5   : > { %2445 = vmatprep.mubr.msk.bf16.mxu0 %vm3014_vm0, %v3013_v35  ;;  %2430 = vmatpush3.bf16.msra.mxu0 %v2680_v45 }
 0x5d6   : > { %2431 = vmatprep.subr.bf16.mxu0 %v3013_v35 }
 0x5d9   : > { %2432 = vmatpush3.bf16.msra.mxu0 %v2681_v46 }
 0x5da   : > { %2433 = vmatprep.subr.bf16.mxu0 %v3013_v35 }
 0x5dd   : > { %2434 = vmatpush3.bf16.msra.mxu0 %v2682_v47 }
 0x5de   : > { %2435 = vmatprep.subr.bf16.mxu0 %v3013_v35 }
 0x5e1   : > { %2436 = vmatpush3.bf16.msra.mxu0 %v2683_v48 }
 0x5e2   : > { %2437 = vmatprep.subr.bf16.mxu0 %v3013_v35 }
 0x5e5   : > { %2438 = vmatpush3.bf16.msra.mxu0 %v2684_v49 }
 0x5e6   : > { %2439 = vmatprep.subr.bf16.mxu0 %v3013_v35 }
 0x5e9   : > { %2440 = vmatpush3.bf16.msra.mxu0 %v2685_v50 }
 0x5ea   : > { %2441 = vmatprep.subr.bf16.mxu0 %v3013_v35 }
 0x6a7   : > { %v2361_v21 = vpop.f32.mrb[8].mxu0 }
 0x6a8   : > { %v2362_v23 = vpop.f32.mrb[9].mxu0 }
 0x6a9   : > { %v2363_v24 = vadd.f32 %v2362_v23, %v2361_v21  ;;  %v2364_v25 = vpop.f32.mrb[10].mxu0  ;;  %v2297_v23 = vld [vmem:[%s724_s17] ss:$0 sm:$0xff] }
 0x6aa   : > { %v2365_v27 = vpop.f32.mrb[11].mxu0 }
 0x6ab   : > { %v1575_v28 = vadd.f32 %v2363_v24, %v2279_v22  ;;  %v2366_v29 = vadd.f32 %v2365_v27, %v2364_v25 }
 0x6ad   : > { %v1578_v31 = vadd.f32 %v2366_v29, %v2279_v22  ;;  %v3633_v33 = vadd.f32 %v1575_v28, %v748_v26  ;;  %v2686_v28 = vld [vmem:[%s3505_s23 + $0x30] sm:$0xff]   ;;  %v2687_v29 = vld [vmem:[%s3505_s23 + $0x38] sm:$0xff]   ;;  %s3907_s23 = sld [smem:[#allocation31_spill]] }
 0x6ae   : > { %2442 = vmatpush3.bf16.msra.mxu0 %v2686_v28 }
 0x6af   : > { %1585 = vadd.xlane.f32.xlu0 %v3633_v33  ;;  %v3636_v34 = vadd.f32 %v1578_v31, %v749_v30  ;;  %v1591_v36 = vmul.f32 %v3633_v33, %v3633_v33  ;;  %2443 = vmatprep.subr.bf16.mxu0 %v3013_v35  ;;  %v2298_v30 = vld [vmem:[%s727_s29] ss:$0 sm:$0xff]  ;;  %s3905_s29 = sld [smem:[#allocation22_spill]] }
 0x6b0   : > { %v2307_v35 = vld [vmem:[%s730_s1] ss:$0 sm:$0xff] }
 0x6b1   : > { %1587 = vadd.xlane.f32.xlu1 %v3636_v34  ;;  %v1592_v37 = vmul.f32 %v3636_v34, %v3636_v34 }
 0x6b2   : > { %2444 = vmatpush3.bf16.msra.mxu0 %v2687_v29 }
 0x6b3   : > { %1593 = vadd.xlane.f32.xlu0 %v1591_v36  ;;  %p3910_p7 = scmp.ne.s32.totalorder %s3907_s23, 0 }
 0x6b5   : > { %1595 = vadd.xlane.f32.xlu1 %v1592_v37  ;;  %s2331_s28 = sshll.u32 %s3905_s29, 7  ;;  %p2873_p1 = pnand %p2872_p13, %p3910_p7 }
 0x6b7   : > { %p2874_p6 = pneg %p2873_p1 }
 0x73c   : > { %v1586_v51 = vpop.xlane.xlu0 %1585 }
 0x73d   : > { %v1589_v52 = vmul.f32 0.0625, %v1586_v51 }
 0x73e   : > { %v1588_v53 = vpop.xlane.xlu1 %1587 }
 0x73f   : > { %v1590_v54 = vmul.f32 0.0625, %v1588_v53  ;;  %v1599_v56 = vmul.f32 %v1589_v52, %v1589_v52  ;;  %v1621_v15 = vsub.f32 %v3633_v33, %v1589_v52 }
 0x740   : > { %v1594_v55 = vpop.xlane.xlu0 %1593 }
 0x741   : > { %v1597_v57 = vmul.f32 0.0625, %v1594_v55  ;;  %v1600_v59 = vmul.f32 %v1590_v54, %v1590_v54  ;;  %v1622_v19 = vsub.f32 %v3636_v34, %v1590_v54 }
 0x742   : > { %v1596_v58 = vpop.xlane.xlu1 %1595 }
 0x743   : > { %v1601_v60 = vsub.f32 %v1597_v57, %v1599_v56  ;;  %v1598_v61 = vmul.f32 0.0625, %v1596_v58 }
 0x745   : > { %v1603_v62 = vmax.f32 %v1601_v60, 0.0  ;;  %v1602_v63 = vsub.f32 %v1598_v61, %v1600_v59 }
 0x747   : > { %v1605_v0 = vmul.f32 1.0666667, %v1603_v62  ;;  %v1604_v1 = vmax.f32 %v1602_v63, 0.0 }
 0x749   : > { %2705 = vrsqrt.f32 %v1605_v0  ;;  %v1606_v2 = vmul.f32 1.0666667, %v1604_v1  ;;  %vm1609_vm2 = vcmp.eq.f32.partialorder %v1605_v0, inf  ;;  %v1612_v5 = vand.u32 2147483648, %v1605_v0 }
 0x74a   : > { %vm1611_vm3 = vcmp.eq.f32.partialorder %v1605_v0, 0.0 }
 0x74b   : > { %2707 = vrsqrt.f32 %v1606_v2  ;;  %vm1616_vm4 = vcmp.eq.f32.partialorder %v1606_v2, inf  ;;  %v1619_v11 = vand.u32 2147483648, %v1606_v2  ;;  %vm1618_vm5 = vcmp.eq.f32.partialorder %v1606_v2, 0.0 }
 0x753   : > { %v2706_v3 = vpop.eup %2705 }
 0x754   : > { %v1608_v4 = vmul.f32 %v2706_v3, %v1605_v0 }
 0x755   : > { %v2708_v6 = vpop.eup %2707 }
 0x756   : > { %v1610_v7 = vsel %vm1609_vm2, %v1605_v0, %v1608_v4  ;;  %v1615_v9 = vmul.f32 %v2708_v6, %v1606_v2 }
 0x757   : > { %v1613_v8 = vsel %vm1611_vm3, %v1612_v5, %v1610_v7 }
 0x758   : > { %v1623_v10 = vadd.f32 0.001, %v1613_v8  ;;  %v1617_v12 = vsel %vm1616_vm4, %v1606_v2, %v1615_v9 }
 0x759   : > { %v1620_v13 = vsel %vm1618_vm5, %v1619_v11, %v1617_v12 }
 0x75a   : > { %2709 = vrcp.f32 %v1623_v10  ;;  %v1624_v14 = vadd.f32 0.001, %v1620_v13 }
 0x75c   : > { %2711 = vrcp.f32 %v1624_v14 }
 0x764   : > { %v2710_v16 = vpop.eup %2709 }
 0x765   : > { %v1626_v18 = vmul.f32 %v2710_v16, %v1621_v15 }
 0x766   : > { %v2712_v20 = vpop.eup %2711 }
 0x767   : > { %v1628_v21 = vmul.f32 %v2712_v20, %v1622_v19  ;;  %v1635_v22 = vmul.f32 %v2296_v17, %v1626_v18 }
 0x769   : > { %v1636_v24 = vmul.f32 %v2296_v17, %v1628_v21  ;;  %v1643_v25 = vadd.f32 %v2297_v23, %v1635_v22  ;;  %v2316_v17 = vld [vmem:[%s733_s10] ss:$0 sm:$0xff]  ;;  %s3909_s10 = sld [smem:[#allocation47_spill]] }
 0x76b   : > { %v1644_v26 = vadd.f32 %v2297_v23, %v1636_v24  ;;  %v2317_v23 = vld [vmem:[%s736_s30] ss:$0 sm:$0xff]  ;;  %s3015_s30 = smov [#allocation11]  }
 0x76c   : > { %s2875_s15 = sshll.u32 %s3015_s30, 4  ;;  %s2876_s15 = int_to_ptr.vmem [resolvable:$false] %s2875_s15 }
 0x76d   : > { %v1645_v27 = vpack.c.bf16 %v1644_v26, %v1643_v25  ;;  %s2877_s26 = scalar_lea.vmem %s2876_s15, 256  ;;  %p2878_p12 = scmp.lt.s32.totalorder %s3712_s16, %s2876_s15 }
 0x76e   : > { %p2879_p11 = scmp.lt.s32.totalorder %s2877_s26, %s2871_s4 }
 0x76f   : > { %2426 = vmatmul.mubr.bf16.vlgmr.msra.gmra.mrb[20].mxu1 %v1645_v27  ;;  %s3710_s6 = scalar_lea.hbm %s3909_s10, %s2331_s28 }
 0x770   : > { %p2880_p2 = por %p2879_p11, %p2878_p12 }
 0x772   : > { %p2881_p8 = pnand %p2880_p2, %p2874_p6 }
 0x842   : > { %v1751_v31 = vpop.f32.mrb[20].mxu1 }
 0x843   : > { %v1752_v33 = vadd.f32 %v2298_v30, %v1751_v31  ;;  %v2427_v34 = vpop.f32.mrb[21].mxu1 }
 0x844   : > { %v1754_v36 = vpop.f32.mrb[22].mxu1 }
 0x845   : > { %v1755_v37 = vadd.f32 %v2298_v30, %v1754_v36  ;;  %v2428_v32 = vpop.f32.mrb[23].mxu1  ;;  %v1758_v38 = vmax.f32 %v1752_v33, 0.0 }
 0x847   : > { %v1759_v39 = vmax.f32 %v1755_v37, 0.0 }
 0x849   : > { %v1760_v40 = vpack.c.bf16 %v1759_v39, %v1758_v38 }
 0x84b   : > { %2446 = vmatmul.mubr.bf16.vlgmr.msra.gmra.mrb[12].mxu0 %v1760_v40 }
 0x91e   : > { %v1866_v41 = vpop.f32.mrb[12].mxu0 }
 0x91f   : > { %v1867_v42 = vadd.f32 %v2307_v35, %v1866_v41  ;;  %v2447_v43 = vpop.f32.mrb[13].mxu0 }
 0x920   : > { %v1869_v44 = vpop.f32.mrb[14].mxu0 }
 0x921   : > { %v1873_v45 = vadd.f32 %v1867_v42, %v1643_v25  ;;  %v1870_v46 = vadd.f32 %v2307_v35, %v1869_v44  ;;  %v2448_v47 = vpop.f32.mrb[15].mxu0 }
 0x923   : > { %v1874_v48 = vadd.f32 %v1870_v46, %v1644_v26  ;;  %1877 = vadd.xlane.f32.xlu0 %v1873_v45  ;;  %v1883_v49 = vmul.f32 %v1873_v45, %v1873_v45 }
 0x925   : > { %1879 = vadd.xlane.f32.xlu1 %v1874_v48  ;;  %v1884_v50 = vmul.f32 %v1874_v48, %v1874_v48 }
 0x927   : > { %1885 = vadd.xlane.f32.xlu0 %v1883_v49 }
 0x929   : > { %1887 = vadd.xlane.f32.xlu1 %v1884_v50 }
 0x9b0   : > { %v1878_v51 = vpop.xlane.xlu0 %1877 }
 0x9b1   : > { %v1881_v52 = vmul.f32 0.0625, %v1878_v51 }
 0x9b2   : > { %v1880_v53 = vpop.xlane.xlu1 %1879 }
 0x9b3   : > { %v1882_v54 = vmul.f32 0.0625, %v1880_v53  ;;  %v1891_v56 = vmul.f32 %v1881_v52, %v1881_v52  ;;  %v1913_v15 = vsub.f32 %v1873_v45, %v1881_v52 }
 0x9b4   : > { %v1886_v55 = vpop.xlane.xlu0 %1885 }
 0x9b5   : > { %v1889_v57 = vmul.f32 0.0625, %v1886_v55  ;;  %v1892_v59 = vmul.f32 %v1882_v54, %v1882_v54  ;;  %v1914_v19 = vsub.f32 %v1874_v48, %v1882_v54 }
 0x9b6   : > { %v1888_v58 = vpop.xlane.xlu1 %1887 }
 0x9b7   : > { %v1893_v60 = vsub.f32 %v1889_v57, %v1891_v56  ;;  %v1890_v61 = vmul.f32 0.0625, %v1888_v58 }
 0x9b9   : > { %v1895_v62 = vmax.f32 %v1893_v60, 0.0  ;;  %v1894_v63 = vsub.f32 %v1890_v61, %v1892_v59 }
 0x9bb   : > { %v1897_v0 = vmul.f32 1.0666667, %v1895_v62  ;;  %v1896_v1 = vmax.f32 %v1894_v63, 0.0 }
 0x9bd   : > { %2713 = vrsqrt.f32 %v1897_v0  ;;  %v1898_v2 = vmul.f32 1.0666667, %v1896_v1  ;;  %vm1901_vm6 = vcmp.eq.f32.partialorder %v1897_v0, inf  ;;  %v1904_v5 = vand.u32 2147483648, %v1897_v0 }
 0x9be   : > { %vm1903_vm7 = vcmp.eq.f32.partialorder %v1897_v0, 0.0 }
 0x9bf   : > { %2715 = vrsqrt.f32 %v1898_v2  ;;  %vm1908_vm8 = vcmp.eq.f32.partialorder %v1898_v2, inf  ;;  %v1911_v11 = vand.u32 2147483648, %v1898_v2  ;;  %vm1910_vm9 = vcmp.eq.f32.partialorder %v1898_v2, 0.0 }
 0x9c7   : > { %v2714_v3 = vpop.eup %2713 }
 0x9c8   : > { %v1900_v4 = vmul.f32 %v2714_v3, %v1897_v0 }
 0x9c9   : > { %v2716_v6 = vpop.eup %2715 }
 0x9ca   : > { %v1902_v7 = vsel %vm1901_vm6, %v1897_v0, %v1900_v4  ;;  %v1907_v9 = vmul.f32 %v2716_v6, %v1898_v2 }
 0x9cb   : > { %v1905_v8 = vsel %vm1903_vm7, %v1904_v5, %v1902_v7 }
 0x9cc   : > { %v1915_v10 = vadd.f32 0.001, %v1905_v8  ;;  %v1909_v12 = vsel %vm1908_vm8, %v1898_v2, %v1907_v9 }
 0x9cd   : > { %v1912_v13 = vsel %vm1910_vm9, %v1911_v11, %v1909_v12 }
 0x9ce   : > { %2717 = vrcp.f32 %v1915_v10  ;;  %v1916_v14 = vadd.f32 0.001, %v1912_v13 }
 0x9d0   : > { %2719 = vrcp.f32 %v1916_v14 }
 0x9d8   : > { %v2718_v16 = vpop.eup %2717 }
 0x9d9   : > { %v1918_v18 = vmul.f32 %v2718_v16, %v1913_v15 }
 0x9da   : > { %v2720_v20 = vpop.eup %2719 }
 0x9db   : > { %v1920_v21 = vmul.f32 %v2720_v20, %v1914_v19  ;;  %v1927_v22 = vmul.f32 %v2316_v17, %v1918_v18 }
 0x9dd   : > { %v1928_v24 = vmul.f32 %v2316_v17, %v1920_v21  ;;  %v1935_v25 = vadd.f32 %v2317_v23, %v1927_v22 }
 0x9df   : > { %v1936_v26 = vadd.f32 %v2317_v23, %v1928_v24 }
 0x9e1   : > { %v2335_v27 = vpack.c.bf16 %v1936_v26, %v1935_v25 }
 0x9e3   : > { %2336 = vst [vmem:[%s3509_s3] sm:$0xff] %v2335_v27  }
 0x9e4   : > { %2884 = shalt.err (!%p2881_p8)
}
 0x9e5   : > { %s2885_s3 = scalar_lea.hbm %s3710_s6, 128  ;;  %s2889_s13 = scalar_lea.hbm %s3909_s10, 256 }
 0x9e6   : > { %p2886_p9 = scmp.ne.s32.totalorder %s3710_s6, %s2885_s3  ;;  %p2890_p3 = scmp.lt.u32.totalorder %s3710_s6, %s3909_s10 }
 0x9e7   : > { %p2891_p0 = scmp.lt.u32.totalorder %s2889_s13, %s2885_s3  ;;  %p2893_p13 = scmp.lt.u32.totalorder %s2885_s3, %s3710_s6 }
 0x9e8   : > { %p2887_p5 = pnand %p2886_p9, %p3910_p7 }
 0x9e9   : > { %p2892_p10 = por %p2891_p0, %p2890_p3 }
 0x9ea   : > { %p2888_p4 = pneg %p2887_p5 }
 0x9eb   : > { %p2894_p1 = por %p2893_p13, %p2892_p10 }
 0x9ed   : > { %p2895_p6 = pnand %p2894_p1, %p2888_p4 }
 0x9ef   : > { %2898 = shalt.err (!%p2895_p6)
}
 0x9f0   : > { %s3016_s21 = smov 64   ;;  %s3017_s20 = smov 4  }
 0x9f1   : > { %2462 = dma.vmem_to_hbm [thread:$0]  (%p3910_p7), %s3712_s16, 128, %s3710_s6, %s1948_s11, %s3016_s21, %s3016_s21, %s3017_s20  }
 0x9f2 PF: > { %s3911_s17 = sld [smem:[#allocation25_spill]]  ;;  %s3912_s5 = sld [smem:[#allocation18_spill]] }
 0x9f3   : > { %s3913_s14 = sld [smem:[#allocation33_spill]] }
 0x9f8   : > { %p2485_p12 = scmp.ge.s32.totalorder %s3911_s17, 2  ;;  %s1976_s29 = sand.u32 1, %s3912_s5  }
 0x9f9   : > { %p3914_p11 = scmp.ne.s32.totalorder %s3913_s14, 0  ;;  %s1977_s1 = scalar_lea.sflag [#allocation4], %s1976_s29 }
 0x9fb   : > { %p2481_p2 = pnand %p2485_p12, %p3914_p11 }
 0x9fd   : > { %2956 = dma.done.wait (!%p2481_p2), %s1977_s1, 128  }
 0x9fe   : > { %2958 = vsyncadd (!%p2481_p2), %s1977_s1, 4294967168  ;;  %s35_s18 = sadd.s32 1, %s3911_s17   ;;  %s3915_s25 = sld [smem:[#allocation16_spill]] }
 0x9ff   : > { %p32_p8 = scmp.ge.s32.totalorder %s35_s18, 6   ;;  %s3916_s26 = sld [smem:[#allocation17_spill]] }
 0xa00   : > { %s3917_s27 = sld [smem:[#allocation27_spill]]  ;;  %s3918_s28 = sld [smem:[#allocation19_spill]] }
 0xa01   : > { %s3919_s29 = sld [smem:[#allocation20_spill]]  ;;  %s3920_s30 = sld [smem:[#allocation32_spill]] }
 0xa02   : > { %s3921_s14 = sld [smem:[#allocation23_spill]]  ;;  %s3922_s15 = sld [smem:[#allocation24_spill]] }
 0xa03   : > { %s3923_s16 = sld [smem:[#allocation26_spill]]  ;;  %s3924_s17 = sld [smem:[#allocation30_spill]] }
 0xa04   :  { %34 = sbr.rel (!%p32_p8) target bundleno = 28 (0x1c), region = 193 }
 0xa0b   :  { %1982 = vsyncpa [#allocation3], 1 }
 0xa0c   :  { %1984 = vsyncpa [#allocation3 + $0x1], 1 }
 0xa0d   :  { %1985 = vsyncpa [#allocation6], 1 }
 0xa0e   :  { %1987 = vsyncpa [#allocation6 + $0x1], 1 }
 0xa0f   :  { %1988 = vsyncpa [#allocation9], 1 }
 0xa10   :  { %1990 = vsyncpa [#allocation9 + $0x1], 1 }
 0xa11   :  { %1991 = vsyncpa [#allocation4], 1 }
 0xa12   :  { %1993 = vsyncpa [#allocation4 + $0x1], 1 }

</bundles_post_ra>
